<compile_context>
chip_gen: v7x
topology: tpu7x:2x2x1
jax: 0.10.0
libtpu: 0.0.40
codegen_flags: <defaults>
</compile_context>

<pallas_src>
import functools

import numpy as np
import jax
import jax.numpy as jnp
from jax.experimental import pallas as pl
from jax.experimental.pallas import tpu as pltpu


# ---------------------------------------------------------------------------
# In-kernel helpers (operate on flat (C, H*W) f32 activations)
# ---------------------------------------------------------------------------
def _conv3x3_flat(a, w9t, b, mask_l, mask_r, W):
    """3x3 / stride 1 / pad 1 conv as a single MXU matmul.

    a      : (Cin, H*W)   row-major flattened spatial
    w9t    : (Cout, 9*Cin) weights, K rows ordered (dy, dx, ci)
    b      : (Cout, 1)
    mask_l : (1, H*W) zero where w == 0   (kills wrap-around of dx == 0 taps)
    mask_r : (1, H*W) zero where w == W-1 (kills wrap-around of dx == 2 taps)
    """
    Cin, S = a.shape
    zpad = jnp.zeros((Cin, W + 1), jnp.float32)
    xe = jnp.concatenate([zpad, a, zpad], axis=1)          # (Cin, S + 2W + 2)
    taps = []
    for dy in range(3):
        for dx in range(3):
            t = xe[:, dy * W + dx: dy * W + dx + S]        # (Cin, S)
            if dx == 0:
                t = t * mask_l
            elif dx == 2:
                t = t * mask_r
            taps.append(t)
    patch = jnp.concatenate(taps, axis=0)                  # (9*Cin, S)
    return jnp.dot(w9t, patch, preferred_element_type=jnp.float32) + b


def _maxpool3x3s2_flat(a, sel, mask_l, mask_r, W):
    """3x3 / stride 2 / pad 1 max pool, fused epilogue style.

    Dense 3x3 window max at every position (VPU), then a stride-2 subsample
    via a {0,1} selection matmul (MXU) -- avoids strided / masked loads.
    a : (C, H*W), sel : (H*W, Ho*Wo)
    """
    C, S = a.shape
    neg = jnp.float32(-jnp.inf)
    ipad = jnp.full((C, W + 1), neg, jnp.float32)
    xe = jnp.concatenate([ipad, a, ipad], axis=1)
    m = jnp.full((C, S), neg, jnp.float32)
    for dy in range(3):
        for dx in range(3):
            t = xe[:, dy * W + dx: dy * W + dx + S]
            if dx == 0:
                t = jnp.where(mask_l > 0, t, neg)
            elif dx == 2:
                t = jnp.where(mask_r > 0, t, neg)
            m = jnp.maximum(m, t)
    # Every window contains its (real) centre pixel, so `m` is finite; HIGHEST
    # precision keeps the selection exact (it only re-orders f32 values).
    return jnp.dot(m, sel, preferred_element_type=jnp.float32,
                   precision=jax.lax.Precision.HIGHEST)


# ---------------------------------------------------------------------------
# Fused ImpalaBlock kernel (one image per grid step)
# ---------------------------------------------------------------------------
def _impala_block_kernel(x_ref,
                         w0_ref, b0_ref,
                         w11_ref, b11_ref, w12_ref, b12_ref,
                         w21_ref, b21_ref, w22_ref, b22_ref,
                         m1_ref, m2_ref, sel_ref,
                         o_ref, *, W, Wo):
    x = x_ref[0].astype(jnp.float32)                       # (Cin, H*W)
    m1l, m1r = m1_ref[0:1, :], m1_ref[1:2, :]
    m2l, m2r = m2_ref[0:1, :], m2_ref[1:2, :]

    # self.convolution  +  self.maxpool (fused epilogue)
    y = _conv3x3_flat(x, w0_ref[...], b0_ref[...], m1l, m1r, W)
    y = _maxpool3x3s2_flat(y, sel_ref[...], m1l, m1r, W)   # (Cout, Ho*Wo)

    # self.residual_block1  (pre-activation ReLUs; relu(0) == 0 so the halo
    # stays exact)
    t = _conv3x3_flat(jnp.maximum(y, 0.0), w11_ref[...], b11_ref[...],
                      m2l, m2r, Wo)
    y = _conv3x3_flat(jnp.maximum(t, 0.0), w12_ref[...], b12_ref[...],
                      m2l, m2r, Wo) + y

    # self.residual_block2
    t = _conv3x3_flat(jnp.maximum(y, 0.0), w21_ref[...], b21_ref[...],
                      m2l, m2r, Wo)
    y = _conv3x3_flat(jnp.maximum(t, 0.0), w22_ref[...], b22_ref[...],
                      m2l, m2r, Wo) + y

    o_ref[0] = y.astype(o_ref.dtype)


# ---------------------------------------------------------------------------
# Wrapper
# ---------------------------------------------------------------------------
def impala_block(x_nchw, params):
    """ImpalaBlock forward. x_nchw: (N, Cin, H, W) -> (N, Cout, H//2, W//2)."""
    N, Cin, H, W = x_nchw.shape
    Cout = params["conv_w"].shape[-1]
    assert H % 2 == 0 and W % 2 == 0, "even spatial dims expected"
    Ho, Wo = H // 2, W // 2
    S, So = H * W, Ho * Wo

    x = x_nchw.reshape(N, Cin, S)                          # free row-major reshape

    def wt(w):                                             # HWIO -> (Cout, 9*Cin)
        ci, co = w.shape[2], w.shape[3]
        return jnp.transpose(w.reshape(9 * ci, co)).astype(jnp.float32)

    def bt(b):
        return b.reshape(-1, 1).astype(jnp.float32)

    def col_masks(h, w):                                   # (2, h*w) f32
        col = np.arange(h * w) % w
        return jnp.asarray(
            np.stack([(col != 0), (col != w - 1)]).astype(np.float32))

    m1, m2 = col_masks(H, W), col_masks(Ho, Wo)

    sel = np.zeros((S, So), np.float32)                    # stride-2 subsample
    for oh in range(Ho):
        for ow in range(Wo):
            sel[2 * oh * W + 2 * ow, oh * Wo + ow] = 1.0
    sel = jnp.asarray(sel)

    consts = [wt(params["conv_w"]), bt(params["conv_b"]),
              wt(params["rb1_w1"]), bt(params["rb1_b1"]),
              wt(params["rb1_w2"]), bt(params["rb1_b2"]),
              wt(params["rb2_w1"]), bt(params["rb2_b1"]),
              wt(params["rb2_w2"]), bt(params["rb2_b2"]),
              m1, m2, sel]

    def full_spec(a):                                      # VMEM-resident constant
        nd = a.ndim
        return pl.BlockSpec(a.shape, lambda n: (0,) * nd)

    out = pl.pallas_call(
        functools.partial(_impala_block_kernel, W=W, Wo=Wo),
        out_shape=jax.ShapeDtypeStruct((N, Cout, So), x_nchw.dtype),
        grid=(N,),
        in_specs=[pl.BlockSpec((1, Cin, S), lambda n: (n, 0, 0))]
                 + [full_spec(c) for c in consts],
        out_specs=pl.BlockSpec((1, Cout, So), lambda n: (n, 0, 0)),
        compiler_params=pltpu.CompilerParams(
            dimension_semantics=("parallel",),
            vmem_limit_bytes=32 * 1024 * 1024),
    )(x, *consts)

    return out.reshape(N, Cout, Ho, Wo)


# ---------------------------------------------------------------------------
# Pure-JAX reference (correctness check only)
# ---------------------------------------------------------------------------
def _ref_impala(x, p):
    def conv(x, w, b):
        y = jax.lax.conv_general_dilated(
            x, w, window_strides=(1, 1), padding=((1, 1), (1, 1)),
            dimension_numbers=("NCHW", "HWIO", "NCHW"))
        return y + b.reshape(1, -1, 1, 1)

    def pool(x):
        return jax.lax.reduce_window(
            x, -jnp.inf, jax.lax.max,
            window_dimensions=(1, 1, 3, 3), window_strides=(1, 1, 2, 2),
            padding=((0, 0), (0, 0), (1, 1), (1, 1)))

    x = conv(x, p["conv_w"], p["conv_b"])
    x = pool(x)
    t = conv(jnp.maximum(x, 0.0), p["rb1_w1"], p["rb1_b1"])
    x = conv(jnp.maximum(t, 0.0), p["rb1_w2"], p["rb1_b2"]) + x
    t = conv(jnp.maximum(x, 0.0), p["rb2_w1"], p["rb2_b1"])
    x = conv(jnp.maximum(t, 0.0), p["rb2_w2"], p["rb2_b2"]) + x
    return x


# ---------------------------------------------------------------------------
# Main
# ---------------------------------------------------------------------------
if __name__ == "__main__":
    N, C_IN, C_OUT, H, W = 2, 4, 8, 16, 16

    key = jax.random.PRNGKey(0)
    keys = jax.random.split(key, 11)

    def w_init(k, cin, cout):
        # deterministic synthetic init (fan-in scaled), HWIO layout
        return jax.random.normal(k, (3, 3, cin, cout), jnp.float32) \
            / jnp.sqrt(9.0 * cin)

    def b_init(k, cout):
        return 0.1 * jax.random.normal(k, (cout,), jnp.float32)

    params = {
        "conv_w": w_init(keys[0], C_IN, C_OUT), "conv_b": b_init(keys[1], C_OUT),
        "rb1_w1": w_init(keys[2], C_OUT, C_OUT), "rb1_b1": b_init(keys[3], C_OUT),
        "rb1_w2": w_init(keys[4], C_OUT, C_OUT), "rb1_b2": b_init(keys[5], C_OUT),
        "rb2_w1": w_init(keys[6], C_OUT, C_OUT), "rb2_b1": b_init(keys[7], C_OUT),
        "rb2_w2": w_init(keys[8], C_OUT, C_OUT), "rb2_b2": b_init(keys[9], C_OUT),
    }

    x = jax.random.normal(keys[10], (N, C_IN, H, W), jnp.float32)

    out = jax.jit(impala_block)(x, params)
    out = jax.block_until_ready(out)

    assert out.shape == (N, C_OUT, H // 2, W // 2), out.shape

    ref = _ref_impala(x, params)
    max_err = float(jnp.max(jnp.abs(out - ref)))
    assert jnp.allclose(out, ref, atol=1e-3, rtol=1e-3), max_err

    print("KERNEL_OK")
</pallas_src>

<mosaic_0001>
module attributes {stable_mosaic.version = 11 : i64} {
  func.func @_impala_block_kernel(%arg0: i32, %arg1: memref<1x4x256xf32, #tpu.memory_space<vmem>>, %arg2: memref<8x36xf32, #tpu.memory_space<vmem>>, %arg3: memref<8x1xf32, #tpu.memory_space<vmem>>, %arg4: memref<8x72xf32, #tpu.memory_space<vmem>>, %arg5: memref<8x1xf32, #tpu.memory_space<vmem>>, %arg6: memref<8x72xf32, #tpu.memory_space<vmem>>, %arg7: memref<8x1xf32, #tpu.memory_space<vmem>>, %arg8: memref<8x72xf32, #tpu.memory_space<vmem>>, %arg9: memref<8x1xf32, #tpu.memory_space<vmem>>, %arg10: memref<8x72xf32, #tpu.memory_space<vmem>>, %arg11: memref<8x1xf32, #tpu.memory_space<vmem>>, %arg12: memref<2x256xf32, #tpu.memory_space<vmem>>, %arg13: memref<2x64xf32, #tpu.memory_space<vmem>>, %arg14: memref<256x64xf32, #tpu.memory_space<vmem>>, %arg15: memref<1x8x64xf32, #tpu.memory_space<vmem>>) attributes {dimension_semantics = [#tpu.dimension_semantics<parallel>], iteration_bounds = array<i64: 2>, scalar_prefetch = 0 : i64, scratch_operands = 0 : i64, tpu.core_type = #tpu.core_type<tc>, window_params = [{transform_indices = @transform_0, window_bounds = array<i64: 1, 4, 256>}, {pipeline_mode = #tpu.pipeline_mode<synchronous>, transform_indices = @transform_1, window_bounds = array<i64: 8, 36>}, {pipeline_mode = #tpu.pipeline_mode<synchronous>, transform_indices = @transform_2, window_bounds = array<i64: 8, 1>}, {pipeline_mode = #tpu.pipeline_mode<synchronous>, transform_indices = @transform_3, window_bounds = array<i64: 8, 72>}, {pipeline_mode = #tpu.pipeline_mode<synchronous>, transform_indices = @transform_4, window_bounds = array<i64: 8, 1>}, {pipeline_mode = #tpu.pipeline_mode<synchronous>, transform_indices = @transform_5, window_bounds = array<i64: 8, 72>}, {pipeline_mode = #tpu.pipeline_mode<synchronous>, transform_indices = @transform_6, window_bounds = array<i64: 8, 1>}, {pipeline_mode = #tpu.pipeline_mode<synchronous>, transform_indices = @transform_7, window_bounds = array<i64: 8, 72>}, {pipeline_mode = #tpu.pipeline_mode<synchronous>, transform_indices = @transform_8, window_bounds = array<i64: 8, 1>}, {pipeline_mode = #tpu.pipeline_mode<synchronous>, transform_indices = @transform_9, window_bounds = array<i64: 8, 72>}, {pipeline_mode = #tpu.pipeline_mode<synchronous>, transform_indices = @transform_10, window_bounds = array<i64: 8, 1>}, {pipeline_mode = #tpu.pipeline_mode<synchronous>, transform_indices = @transform_11, window_bounds = array<i64: 2, 256>}, {pipeline_mode = #tpu.pipeline_mode<synchronous>, transform_indices = @transform_12, window_bounds = array<i64: 2, 64>}, {pipeline_mode = #tpu.pipeline_mode<synchronous>, transform_indices = @transform_13, window_bounds = array<i64: 256, 64>}, {transform_indices = @transform_14, window_bounds = array<i64: 1, 8, 64>}]} {
    %c0 = arith.constant 0 : index
    %c0_0 = arith.constant 0 : index
    %c0_1 = arith.constant 0 : index
    %0 = vector.load %arg1[%c0, %c0_0, %c0_1] : memref<1x4x256xf32, #tpu.memory_space<vmem>>, vector<1x4x256xf32>
    %1 = vector.shape_cast %0 : vector<1x4x256xf32> to vector<4x256xf32>
    %c0_2 = arith.constant 0 : index
    %c0_3 = arith.constant 0 : index
    %2 = vector.load %arg12[%c0_2, %c0_3] : memref<2x256xf32, #tpu.memory_space<vmem>>, vector<1x256xf32>
    %c1 = arith.constant 1 : index
    %c0_4 = arith.constant 0 : index
    %3 = vector.load %arg12[%c1, %c0_4] : memref<2x256xf32, #tpu.memory_space<vmem>>, vector<1x256xf32>
    %c0_5 = arith.constant 0 : index
    %c0_6 = arith.constant 0 : index
    %4 = vector.load %arg13[%c0_5, %c0_6] : memref<2x64xf32, #tpu.memory_space<vmem>>, vector<1x64xf32>
    %c1_7 = arith.constant 1 : index
    %c0_8 = arith.constant 0 : index
    %5 = vector.load %arg13[%c1_7, %c0_8] : memref<2x64xf32, #tpu.memory_space<vmem>>, vector<1x64xf32>
    %c0_9 = arith.constant 0 : index
    %c0_10 = arith.constant 0 : index
    %6 = vector.load %arg2[%c0_9, %c0_10] : memref<8x36xf32, #tpu.memory_space<vmem>>, vector<8x36xf32>
    %c0_11 = arith.constant 0 : index
    %c0_12 = arith.constant 0 : index
    %7 = vector.load %arg3[%c0_11, %c0_12] : memref<8x1xf32, #tpu.memory_space<vmem>>, vector<8x1xf32>
    %cst = arith.constant 0.000000e+00 : f32
    %8 = vector.broadcast %cst : f32 to vector<4x17xf32>
    %9 = tpu.concatenate %8, %1, %8 in 1 : vector<4x17xf32>, vector<4x256xf32>, vector<4x17xf32> -> vector<4x290xf32>
    %10 = vector.extract_strided_slice %9 {offsets = [0, 0], sizes = [4, 256], strides = [1, 1]} : vector<4x290xf32> to vector<4x256xf32>
    %11 = vector.broadcast %2 : vector<1x256xf32> to vector<4x256xf32>
    %12 = arith.mulf %10, %11 : vector<4x256xf32>
    %13 = vector.extract_strided_slice %9 {offsets = [0, 1], sizes = [4, 256], strides = [1, 1]} : vector<4x290xf32> to vector<4x256xf32>
    %14 = vector.extract_strided_slice %9 {offsets = [0, 2], sizes = [4, 256], strides = [1, 1]} : vector<4x290xf32> to vector<4x256xf32>
    %15 = vector.broadcast %3 : vector<1x256xf32> to vector<4x256xf32>
    %16 = arith.mulf %14, %15 : vector<4x256xf32>
    %17 = vector.extract_strided_slice %9 {offsets = [0, 16], sizes = [4, 256], strides = [1, 1]} : vector<4x290xf32> to vector<4x256xf32>
    %18 = vector.broadcast %2 : vector<1x256xf32> to vector<4x256xf32>
    %19 = arith.mulf %17, %18 : vector<4x256xf32>
    %20 = vector.extract_strided_slice %9 {offsets = [0, 17], sizes = [4, 256], strides = [1, 1]} : vector<4x290xf32> to vector<4x256xf32>
    %21 = vector.extract_strided_slice %9 {offsets = [0, 18], sizes = [4, 256], strides = [1, 1]} : vector<4x290xf32> to vector<4x256xf32>
    %22 = vector.broadcast %3 : vector<1x256xf32> to vector<4x256xf32>
    %23 = arith.mulf %21, %22 : vector<4x256xf32>
    %24 = vector.extract_strided_slice %9 {offsets = [0, 32], sizes = [4, 256], strides = [1, 1]} : vector<4x290xf32> to vector<4x256xf32>
    %25 = vector.broadcast %2 : vector<1x256xf32> to vector<4x256xf32>
    %26 = arith.mulf %24, %25 : vector<4x256xf32>
    %27 = vector.extract_strided_slice %9 {offsets = [0, 33], sizes = [4, 256], strides = [1, 1]} : vector<4x290xf32> to vector<4x256xf32>
    %28 = vector.extract_strided_slice %9 {offsets = [0, 34], sizes = [4, 256], strides = [1, 1]} : vector<4x290xf32> to vector<4x256xf32>
    %29 = vector.broadcast %3 : vector<1x256xf32> to vector<4x256xf32>
    %30 = arith.mulf %28, %29 : vector<4x256xf32>
    %31 = tpu.concatenate %12, %13, %16, %19, %20, %23, %26, %27, %30 in 0 : vector<4x256xf32>, vector<4x256xf32>, vector<4x256xf32>, vector<4x256xf32>, vector<4x256xf32>, vector<4x256xf32>, vector<4x256xf32>, vector<4x256xf32>, vector<4x256xf32> -> vector<36x256xf32>
    %cst_13 = arith.constant dense<0.000000e+00> : vector<8x256xf32>
    %32 = tpu.matmul %6, %31, %cst_13 {dimension_numbers = #tpu.dot_dimension_numbers<[1], [0], [0], [1], [0, 0, 1, 1], [], []>} : vector<8x36xf32>, vector<36x256xf32>, vector<8x256xf32> -> vector<8x256xf32>
    %33 = vector.broadcast %7 : vector<8x1xf32> to vector<8x256xf32>
    %34 = arith.addf %32, %33 : vector<8x256xf32>
    %c0_14 = arith.constant 0 : index
    %c0_15 = arith.constant 0 : index
    %35 = vector.load %arg14[%c0_14, %c0_15] : memref<256x64xf32, #tpu.memory_space<vmem>>, vector<256x64xf32>
    %cst_16 = arith.constant 0xFF800000 : f32
    %36 = vector.broadcast %cst_16 : f32 to vector<8x17xf32>
    %37 = tpu.concatenate %36, %34, %36 in 1 : vector<8x17xf32>, vector<8x256xf32>, vector<8x17xf32> -> vector<8x290xf32>
    %cst_17 = arith.constant 0xFF800000 : f32
    %38 = vector.broadcast %cst_17 : f32 to vector<8x256xf32>
    %39 = vector.extract_strided_slice %37 {offsets = [0, 0], sizes = [8, 256], strides = [1, 1]} : vector<8x290xf32> to vector<8x256xf32>
    %cst_18 = arith.constant 0.000000e+00 : f32
    %40 = vector.broadcast %cst_18 : f32 to vector<1x256xf32>
    %41 = arith.cmpf ogt, %2, %40 : vector<1x256xf32>
    %cst_19 = arith.constant 0xFF800000 : f32
    %42 = vector.shape_cast %41 : vector<1x256xi1> to vector<1x256xi1>
    %43 = vector.broadcast %42 : vector<1x256xi1> to vector<8x256xi1>
    %44 = vector.broadcast %cst_19 : f32 to vector<8x256xf32>
    %45 = arith.select %43, %39, %44 : vector<8x256xi1>, vector<8x256xf32>
    %46 = arith.maximumf %38, %45 : vector<8x256xf32>
    %47 = vector.extract_strided_slice %37 {offsets = [0, 1], sizes = [8, 256], strides = [1, 1]} : vector<8x290xf32> to vector<8x256xf32>
    %48 = arith.maximumf %46, %47 : vector<8x256xf32>
    %49 = vector.extract_strided_slice %37 {offsets = [0, 2], sizes = [8, 256], strides = [1, 1]} : vector<8x290xf32> to vector<8x256xf32>
    %cst_20 = arith.constant 0.000000e+00 : f32
    %50 = vector.broadcast %cst_20 : f32 to vector<1x256xf32>
    %51 = arith.cmpf ogt, %3, %50 : vector<1x256xf32>
    %cst_21 = arith.constant 0xFF800000 : f32
    %52 = vector.shape_cast %51 : vector<1x256xi1> to vector<1x256xi1>
    %53 = vector.broadcast %52 : vector<1x256xi1> to vector<8x256xi1>
    %54 = vector.broadcast %cst_21 : f32 to vector<8x256xf32>
    %55 = arith.select %53, %49, %54 : vector<8x256xi1>, vector<8x256xf32>
    %56 = arith.maximumf %48, %55 : vector<8x256xf32>
    %57 = vector.extract_strided_slice %37 {offsets = [0, 16], sizes = [8, 256], strides = [1, 1]} : vector<8x290xf32> to vector<8x256xf32>
    %cst_22 = arith.constant 0.000000e+00 : f32
    %58 = vector.broadcast %cst_22 : f32 to vector<1x256xf32>
    %59 = arith.cmpf ogt, %2, %58 : vector<1x256xf32>
    %cst_23 = arith.constant 0xFF800000 : f32
    %60 = vector.shape_cast %59 : vector<1x256xi1> to vector<1x256xi1>
    %61 = vector.broadcast %60 : vector<1x256xi1> to vector<8x256xi1>
    %62 = vector.broadcast %cst_23 : f32 to vector<8x256xf32>
    %63 = arith.select %61, %57, %62 : vector<8x256xi1>, vector<8x256xf32>
    %64 = arith.maximumf %56, %63 : vector<8x256xf32>
    %65 = vector.extract_strided_slice %37 {offsets = [0, 17], sizes = [8, 256], strides = [1, 1]} : vector<8x290xf32> to vector<8x256xf32>
    %66 = arith.maximumf %64, %65 : vector<8x256xf32>
    %67 = vector.extract_strided_slice %37 {offsets = [0, 18], sizes = [8, 256], strides = [1, 1]} : vector<8x290xf32> to vector<8x256xf32>
    %cst_24 = arith.constant 0.000000e+00 : f32
    %68 = vector.broadcast %cst_24 : f32 to vector<1x256xf32>
    %69 = arith.cmpf ogt, %3, %68 : vector<1x256xf32>
    %cst_25 = arith.constant 0xFF800000 : f32
    %70 = vector.shape_cast %69 : vector<1x256xi1> to vector<1x256xi1>
    %71 = vector.broadcast %70 : vector<1x256xi1> to vector<8x256xi1>
    %72 = vector.broadcast %cst_25 : f32 to vector<8x256xf32>
    %73 = arith.select %71, %67, %72 : vector<8x256xi1>, vector<8x256xf32>
    %74 = arith.maximumf %66, %73 : vector<8x256xf32>
    %75 = vector.extract_strided_slice %37 {offsets = [0, 32], sizes = [8, 256], strides = [1, 1]} : vector<8x290xf32> to vector<8x256xf32>
    %cst_26 = arith.constant 0.000000e+00 : f32
    %76 = vector.broadcast %cst_26 : f32 to vector<1x256xf32>
    %77 = arith.cmpf ogt, %2, %76 : vector<1x256xf32>
    %cst_27 = arith.constant 0xFF800000 : f32
    %78 = vector.shape_cast %77 : vector<1x256xi1> to vector<1x256xi1>
    %79 = vector.broadcast %78 : vector<1x256xi1> to vector<8x256xi1>
    %80 = vector.broadcast %cst_27 : f32 to vector<8x256xf32>
    %81 = arith.select %79, %75, %80 : vector<8x256xi1>, vector<8x256xf32>
    %82 = arith.maximumf %74, %81 : vector<8x256xf32>
    %83 = vector.extract_strided_slice %37 {offsets = [0, 33], sizes = [8, 256], strides = [1, 1]} : vector<8x290xf32> to vector<8x256xf32>
    %84 = arith.maximumf %82, %83 : vector<8x256xf32>
    %85 = vector.extract_strided_slice %37 {offsets = [0, 34], sizes = [8, 256], strides = [1, 1]} : vector<8x290xf32> to vector<8x256xf32>
    %cst_28 = arith.constant 0.000000e+00 : f32
    %86 = vector.broadcast %cst_28 : f32 to vector<1x256xf32>
    %87 = arith.cmpf ogt, %3, %86 : vector<1x256xf32>
    %cst_29 = arith.constant 0xFF800000 : f32
    %88 = vector.shape_cast %87 : vector<1x256xi1> to vector<1x256xi1>
    %89 = vector.broadcast %88 : vector<1x256xi1> to vector<8x256xi1>
    %90 = vector.broadcast %cst_29 : f32 to vector<8x256xf32>
    %91 = arith.select %89, %85, %90 : vector<8x256xi1>, vector<8x256xf32>
    %92 = arith.maximumf %84, %91 : vector<8x256xf32>
    %cst_30 = arith.constant dense<0.000000e+00> : vector<8x64xf32>
    %93 = tpu.matmul %92, %35, %cst_30 {dimension_numbers = #tpu.dot_dimension_numbers<[1], [0], [0], [1], [0, 0, 1, 1], [], []>, precision = #tpu.contract_precision<fp32>} : vector<8x256xf32>, vector<256x64xf32>, vector<8x64xf32> -> vector<8x64xf32>
    %cst_31 = arith.constant 0.000000e+00 : f32
    %94 = vector.broadcast %cst_31 : f32 to vector<8x64xf32>
    %95 = arith.maximumf %93, %94 : vector<8x64xf32>
    %c0_32 = arith.constant 0 : index
    %c0_33 = arith.constant 0 : index
    %96 = vector.load %arg4[%c0_32, %c0_33] : memref<8x72xf32, #tpu.memory_space<vmem>>, vector<8x72xf32>
    %c0_34 = arith.constant 0 : index
    %c0_35 = arith.constant 0 : index
    %97 = vector.load %arg5[%c0_34, %c0_35] : memref<8x1xf32, #tpu.memory_space<vmem>>, vector<8x1xf32>
    %cst_36 = arith.constant 0.000000e+00 : f32
    %98 = vector.broadcast %cst_36 : f32 to vector<8x9xf32>
    %99 = tpu.concatenate %98, %95, %98 in 1 : vector<8x9xf32>, vector<8x64xf32>, vector<8x9xf32> -> vector<8x82xf32>
    %100 = vector.extract_strided_slice %99 {offsets = [0, 0], sizes = [8, 64], strides = [1, 1]} : vector<8x82xf32> to vector<8x64xf32>
    %101 = vector.broadcast %4 : vector<1x64xf32> to vector<8x64xf32>
    %102 = arith.mulf %100, %101 : vector<8x64xf32>
    %103 = vector.extract_strided_slice %99 {offsets = [0, 1], sizes = [8, 64], strides = [1, 1]} : vector<8x82xf32> to vector<8x64xf32>
    %104 = vector.extract_strided_slice %99 {offsets = [0, 2], sizes = [8, 64], strides = [1, 1]} : vector<8x82xf32> to vector<8x64xf32>
    %105 = vector.broadcast %5 : vector<1x64xf32> to vector<8x64xf32>
    %106 = arith.mulf %104, %105 : vector<8x64xf32>
    %107 = vector.extract_strided_slice %99 {offsets = [0, 8], sizes = [8, 64], strides = [1, 1]} : vector<8x82xf32> to vector<8x64xf32>
    %108 = vector.broadcast %4 : vector<1x64xf32> to vector<8x64xf32>
    %109 = arith.mulf %107, %108 : vector<8x64xf32>
    %110 = vector.extract_strided_slice %99 {offsets = [0, 9], sizes = [8, 64], strides = [1, 1]} : vector<8x82xf32> to vector<8x64xf32>
    %111 = vector.extract_strided_slice %99 {offsets = [0, 10], sizes = [8, 64], strides = [1, 1]} : vector<8x82xf32> to vector<8x64xf32>
    %112 = vector.broadcast %5 : vector<1x64xf32> to vector<8x64xf32>
    %113 = arith.mulf %111, %112 : vector<8x64xf32>
    %114 = vector.extract_strided_slice %99 {offsets = [0, 16], sizes = [8, 64], strides = [1, 1]} : vector<8x82xf32> to vector<8x64xf32>
    %115 = vector.broadcast %4 : vector<1x64xf32> to vector<8x64xf32>
    %116 = arith.mulf %114, %115 : vector<8x64xf32>
    %117 = vector.extract_strided_slice %99 {offsets = [0, 17], sizes = [8, 64], strides = [1, 1]} : vector<8x82xf32> to vector<8x64xf32>
    %118 = vector.extract_strided_slice %99 {offsets = [0, 18], sizes = [8, 64], strides = [1, 1]} : vector<8x82xf32> to vector<8x64xf32>
    %119 = vector.broadcast %5 : vector<1x64xf32> to vector<8x64xf32>
    %120 = arith.mulf %118, %119 : vector<8x64xf32>
    %121 = tpu.concatenate %102, %103, %106, %109, %110, %113, %116, %117, %120 in 0 : vector<8x64xf32>, vector<8x64xf32>, vector<8x64xf32>, vector<8x64xf32>, vector<8x64xf32>, vector<8x64xf32>, vector<8x64xf32>, vector<8x64xf32>, vector<8x64xf32> -> vector<72x64xf32>
    %cst_37 = arith.constant dense<0.000000e+00> : vector<8x64xf32>
    %122 = tpu.matmul %96, %121, %cst_37 {dimension_numbers = #tpu.dot_dimension_numbers<[1], [0], [0], [1], [0, 0, 1, 1], [], []>} : vector<8x72xf32>, vector<72x64xf32>, vector<8x64xf32> -> vector<8x64xf32>
    %123 = vector.broadcast %97 : vector<8x1xf32> to vector<8x64xf32>
    %124 = arith.addf %122, %123 : vector<8x64xf32>
    %cst_38 = arith.constant 0.000000e+00 : f32
    %125 = vector.broadcast %cst_38 : f32 to vector<8x64xf32>
    %126 = arith.maximumf %124, %125 : vector<8x64xf32>
    %c0_39 = arith.constant 0 : index
    %c0_40 = arith.constant 0 : index
    %127 = vector.load %arg6[%c0_39, %c0_40] : memref<8x72xf32, #tpu.memory_space<vmem>>, vector<8x72xf32>
    %c0_41 = arith.constant 0 : index
    %c0_42 = arith.constant 0 : index
    %128 = vector.load %arg7[%c0_41, %c0_42] : memref<8x1xf32, #tpu.memory_space<vmem>>, vector<8x1xf32>
    %cst_43 = arith.constant 0.000000e+00 : f32
    %129 = vector.broadcast %cst_43 : f32 to vector<8x9xf32>
    %130 = tpu.concatenate %129, %126, %129 in 1 : vector<8x9xf32>, vector<8x64xf32>, vector<8x9xf32> -> vector<8x82xf32>
    %131 = vector.extract_strided_slice %130 {offsets = [0, 0], sizes = [8, 64], strides = [1, 1]} : vector<8x82xf32> to vector<8x64xf32>
    %132 = vector.broadcast %4 : vector<1x64xf32> to vector<8x64xf32>
    %133 = arith.mulf %131, %132 : vector<8x64xf32>
    %134 = vector.extract_strided_slice %130 {offsets = [0, 1], sizes = [8, 64], strides = [1, 1]} : vector<8x82xf32> to vector<8x64xf32>
    %135 = vector.extract_strided_slice %130 {offsets = [0, 2], sizes = [8, 64], strides = [1, 1]} : vector<8x82xf32> to vector<8x64xf32>
    %136 = vector.broadcast %5 : vector<1x64xf32> to vector<8x64xf32>
    %137 = arith.mulf %135, %136 : vector<8x64xf32>
    %138 = vector.extract_strided_slice %130 {offsets = [0, 8], sizes = [8, 64], strides = [1, 1]} : vector<8x82xf32> to vector<8x64xf32>
    %139 = vector.broadcast %4 : vector<1x64xf32> to vector<8x64xf32>
    %140 = arith.mulf %138, %139 : vector<8x64xf32>
    %141 = vector.extract_strided_slice %130 {offsets = [0, 9], sizes = [8, 64], strides = [1, 1]} : vector<8x82xf32> to vector<8x64xf32>
    %142 = vector.extract_strided_slice %130 {offsets = [0, 10], sizes = [8, 64], strides = [1, 1]} : vector<8x82xf32> to vector<8x64xf32>
    %143 = vector.broadcast %5 : vector<1x64xf32> to vector<8x64xf32>
    %144 = arith.mulf %142, %143 : vector<8x64xf32>
    %145 = vector.extract_strided_slice %130 {offsets = [0, 16], sizes = [8, 64], strides = [1, 1]} : vector<8x82xf32> to vector<8x64xf32>
    %146 = vector.broadcast %4 : vector<1x64xf32> to vector<8x64xf32>
    %147 = arith.mulf %145, %146 : vector<8x64xf32>
    %148 = vector.extract_strided_slice %130 {offsets = [0, 17], sizes = [8, 64], strides = [1, 1]} : vector<8x82xf32> to vector<8x64xf32>
    %149 = vector.extract_strided_slice %130 {offsets = [0, 18], sizes = [8, 64], strides = [1, 1]} : vector<8x82xf32> to vector<8x64xf32>
    %150 = vector.broadcast %5 : vector<1x64xf32> to vector<8x64xf32>
    %151 = arith.mulf %149, %150 : vector<8x64xf32>
    %152 = tpu.concatenate %133, %134, %137, %140, %141, %144, %147, %148, %151 in 0 : vector<8x64xf32>, vector<8x64xf32>, vector<8x64xf32>, vector<8x64xf32>, vector<8x64xf32>, vector<8x64xf32>, vector<8x64xf32>, vector<8x64xf32>, vector<8x64xf32> -> vector<72x64xf32>
    %cst_44 = arith.constant dense<0.000000e+00> : vector<8x64xf32>
    %153 = tpu.matmul %127, %152, %cst_44 {dimension_numbers = #tpu.dot_dimension_numbers<[1], [0], [0], [1], [0, 0, 1, 1], [], []>} : vector<8x72xf32>, vector<72x64xf32>, vector<8x64xf32> -> vector<8x64xf32>
    %154 = vector.broadcast %128 : vector<8x1xf32> to vector<8x64xf32>
    %155 = arith.addf %153, %154 : vector<8x64xf32>
    %156 = arith.addf %155, %93 : vector<8x64xf32>
    %cst_45 = arith.constant 0.000000e+00 : f32
    %157 = vector.broadcast %cst_45 : f32 to vector<8x64xf32>
    %158 = arith.maximumf %156, %157 : vector<8x64xf32>
    %c0_46 = arith.constant 0 : index
    %c0_47 = arith.constant 0 : index
    %159 = vector.load %arg8[%c0_46, %c0_47] : memref<8x72xf32, #tpu.memory_space<vmem>>, vector<8x72xf32>
    %c0_48 = arith.constant 0 : index
    %c0_49 = arith.constant 0 : index
    %160 = vector.load %arg9[%c0_48, %c0_49] : memref<8x1xf32, #tpu.memory_space<vmem>>, vector<8x1xf32>
    %cst_50 = arith.constant 0.000000e+00 : f32
    %161 = vector.broadcast %cst_50 : f32 to vector<8x9xf32>
    %162 = tpu.concatenate %161, %158, %161 in 1 : vector<8x9xf32>, vector<8x64xf32>, vector<8x9xf32> -> vector<8x82xf32>
    %163 = vector.extract_strided_slice %162 {offsets = [0, 0], sizes = [8, 64], strides = [1, 1]} : vector<8x82xf32> to vector<8x64xf32>
    %164 = vector.broadcast %4 : vector<1x64xf32> to vector<8x64xf32>
    %165 = arith.mulf %163, %164 : vector<8x64xf32>
    %166 = vector.extract_strided_slice %162 {offsets = [0, 1], sizes = [8, 64], strides = [1, 1]} : vector<8x82xf32> to vector<8x64xf32>
    %167 = vector.extract_strided_slice %162 {offsets = [0, 2], sizes = [8, 64], strides = [1, 1]} : vector<8x82xf32> to vector<8x64xf32>
    %168 = vector.broadcast %5 : vector<1x64xf32> to vector<8x64xf32>
    %169 = arith.mulf %167, %168 : vector<8x64xf32>
    %170 = vector.extract_strided_slice %162 {offsets = [0, 8], sizes = [8, 64], strides = [1, 1]} : vector<8x82xf32> to vector<8x64xf32>
    %171 = vector.broadcast %4 : vector<1x64xf32> to vector<8x64xf32>
    %172 = arith.mulf %170, %171 : vector<8x64xf32>
    %173 = vector.extract_strided_slice %162 {offsets = [0, 9], sizes = [8, 64], strides = [1, 1]} : vector<8x82xf32> to vector<8x64xf32>
    %174 = vector.extract_strided_slice %162 {offsets = [0, 10], sizes = [8, 64], strides = [1, 1]} : vector<8x82xf32> to vector<8x64xf32>
    %175 = vector.broadcast %5 : vector<1x64xf32> to vector<8x64xf32>
    %176 = arith.mulf %174, %175 : vector<8x64xf32>
    %177 = vector.extract_strided_slice %162 {offsets = [0, 16], sizes = [8, 64], strides = [1, 1]} : vector<8x82xf32> to vector<8x64xf32>
    %178 = vector.broadcast %4 : vector<1x64xf32> to vector<8x64xf32>
    %179 = arith.mulf %177, %178 : vector<8x64xf32>
    %180 = vector.extract_strided_slice %162 {offsets = [0, 17], sizes = [8, 64], strides = [1, 1]} : vector<8x82xf32> to vector<8x64xf32>
    %181 = vector.extract_strided_slice %162 {offsets = [0, 18], sizes = [8, 64], strides = [1, 1]} : vector<8x82xf32> to vector<8x64xf32>
    %182 = vector.broadcast %5 : vector<1x64xf32> to vector<8x64xf32>
    %183 = arith.mulf %181, %182 : vector<8x64xf32>
    %184 = tpu.concatenate %165, %166, %169, %172, %173, %176, %179, %180, %183 in 0 : vector<8x64xf32>, vector<8x64xf32>, vector<8x64xf32>, vector<8x64xf32>, vector<8x64xf32>, vector<8x64xf32>, vector<8x64xf32>, vector<8x64xf32>, vector<8x64xf32> -> vector<72x64xf32>
    %cst_51 = arith.constant dense<0.000000e+00> : vector<8x64xf32>
    %185 = tpu.matmul %159, %184, %cst_51 {dimension_numbers = #tpu.dot_dimension_numbers<[1], [0], [0], [1], [0, 0, 1, 1], [], []>} : vector<8x72xf32>, vector<72x64xf32>, vector<8x64xf32> -> vector<8x64xf32>
    %186 = vector.broadcast %160 : vector<8x1xf32> to vector<8x64xf32>
    %187 = arith.addf %185, %186 : vector<8x64xf32>
    %cst_52 = arith.constant 0.000000e+00 : f32
    %188 = vector.broadcast %cst_52 : f32 to vector<8x64xf32>
    %189 = arith.maximumf %187, %188 : vector<8x64xf32>
    %c0_53 = arith.constant 0 : index
    %c0_54 = arith.constant 0 : index
    %190 = vector.load %arg10[%c0_53, %c0_54] : memref<8x72xf32, #tpu.memory_space<vmem>>, vector<8x72xf32>
    %c0_55 = arith.constant 0 : index
    %c0_56 = arith.constant 0 : index
    %191 = vector.load %arg11[%c0_55, %c0_56] : memref<8x1xf32, #tpu.memory_space<vmem>>, vector<8x1xf32>
    %cst_57 = arith.constant 0.000000e+00 : f32
    %192 = vector.broadcast %cst_57 : f32 to vector<8x9xf32>
    %193 = tpu.concatenate %192, %189, %192 in 1 : vector<8x9xf32>, vector<8x64xf32>, vector<8x9xf32> -> vector<8x82xf32>
    %194 = vector.extract_strided_slice %193 {offsets = [0, 0], sizes = [8, 64], strides = [1, 1]} : vector<8x82xf32> to vector<8x64xf32>
    %195 = vector.broadcast %4 : vector<1x64xf32> to vector<8x64xf32>
    %196 = arith.mulf %194, %195 : vector<8x64xf32>
    %197 = vector.extract_strided_slice %193 {offsets = [0, 1], sizes = [8, 64], strides = [1, 1]} : vector<8x82xf32> to vector<8x64xf32>
    %198 = vector.extract_strided_slice %193 {offsets = [0, 2], sizes = [8, 64], strides = [1, 1]} : vector<8x82xf32> to vector<8x64xf32>
    %199 = vector.broadcast %5 : vector<1x64xf32> to vector<8x64xf32>
    %200 = arith.mulf %198, %199 : vector<8x64xf32>
    %201 = vector.extract_strided_slice %193 {offsets = [0, 8], sizes = [8, 64], strides = [1, 1]} : vector<8x82xf32> to vector<8x64xf32>
    %202 = vector.broadcast %4 : vector<1x64xf32> to vector<8x64xf32>
    %203 = arith.mulf %201, %202 : vector<8x64xf32>
    %204 = vector.extract_strided_slice %193 {offsets = [0, 9], sizes = [8, 64], strides = [1, 1]} : vector<8x82xf32> to vector<8x64xf32>
    %205 = vector.extract_strided_slice %193 {offsets = [0, 10], sizes = [8, 64], strides = [1, 1]} : vector<8x82xf32> to vector<8x64xf32>
    %206 = vector.broadcast %5 : vector<1x64xf32> to vector<8x64xf32>
    %207 = arith.mulf %205, %206 : vector<8x64xf32>
    %208 = vector.extract_strided_slice %193 {offsets = [0, 16], sizes = [8, 64], strides = [1, 1]} : vector<8x82xf32> to vector<8x64xf32>
    %209 = vector.broadcast %4 : vector<1x64xf32> to vector<8x64xf32>
    %210 = arith.mulf %208, %209 : vector<8x64xf32>
    %211 = vector.extract_strided_slice %193 {offsets = [0, 17], sizes = [8, 64], strides = [1, 1]} : vector<8x82xf32> to vector<8x64xf32>
    %212 = vector.extract_strided_slice %193 {offsets = [0, 18], sizes = [8, 64], strides = [1, 1]} : vector<8x82xf32> to vector<8x64xf32>
    %213 = vector.broadcast %5 : vector<1x64xf32> to vector<8x64xf32>
    %214 = arith.mulf %212, %213 : vector<8x64xf32>
    %215 = tpu.concatenate %196, %197, %200, %203, %204, %207, %210, %211, %214 in 0 : vector<8x64xf32>, vector<8x64xf32>, vector<8x64xf32>, vector<8x64xf32>, vector<8x64xf32>, vector<8x64xf32>, vector<8x64xf32>, vector<8x64xf32>, vector<8x64xf32> -> vector<72x64xf32>
    %cst_58 = arith.constant dense<0.000000e+00> : vector<8x64xf32>
    %216 = tpu.matmul %190, %215, %cst_58 {dimension_numbers = #tpu.dot_dimension_numbers<[1], [0], [0], [1], [0, 0, 1, 1], [], []>} : vector<8x72xf32>, vector<72x64xf32>, vector<8x64xf32> -> vector<8x64xf32>
    %217 = vector.broadcast %191 : vector<8x1xf32> to vector<8x64xf32>
    %218 = arith.addf %216, %217 : vector<8x64xf32>
    %219 = arith.addf %218, %156 : vector<8x64xf32>
    %c0_59 = arith.constant 0 : index
    %c0_60 = arith.constant 0 : index
    %c0_61 = arith.constant 0 : index
    %220 = vector.load %arg15[%c0_59, %c0_60, %c0_61] : memref<1x8x64xf32, #tpu.memory_space<vmem>>, vector<1x8x64xf32>
    %221 = vector.shape_cast %220 : vector<1x8x64xf32> to vector<8x64xf32>
    %222 = vector.shape_cast %219 : vector<8x64xf32> to vector<1x8x64xf32>
    tpu.vector_store %arg15[%c0_59, %c0_60, %c0_61], %222 {strides = array<i32>} : memref<1x8x64xf32, #tpu.memory_space<vmem>>, vector<1x8x64xf32>,
    return
  }
  func.func @transform_0(%arg0: i32) -> (i32, i32, i32) {
    %c0_i32 = arith.constant 0 : i32
    %c0_i32_0 = arith.constant 0 : i32
    %c0_i32_1 = arith.constant 0 : i32
    return %arg0, %c0_i32, %c0_i32_0 : i32, i32, i32
  }
  func.func @transform_1(%arg0: i32) -> (i32, i32) {
    %c0_i32 = arith.constant 0 : i32
    %c0_i32_0 = arith.constant 0 : i32
    %c0_i32_1 = arith.constant 0 : i32
    return %c0_i32, %c0_i32_0 : i32, i32
  }
  func.func @transform_2(%arg0: i32) -> (i32, i32) {
    %c0_i32 = arith.constant 0 : i32
    %c0_i32_0 = arith.constant 0 : i32
    %c0_i32_1 = arith.constant 0 : i32
    return %c0_i32, %c0_i32_0 : i32, i32
  }
  func.func @transform_3(%arg0: i32) -> (i32, i32) {
    %c0_i32 = arith.constant 0 : i32
    %c0_i32_0 = arith.constant 0 : i32
    %c0_i32_1 = arith.constant 0 : i32
    return %c0_i32, %c0_i32_0 : i32, i32
  }
  func.func @transform_4(%arg0: i32) -> (i32, i32) {
    %c0_i32 = arith.constant 0 : i32
    %c0_i32_0 = arith.constant 0 : i32
    %c0_i32_1 = arith.constant 0 : i32
    return %c0_i32, %c0_i32_0 : i32, i32
  }
  func.func @transform_5(%arg0: i32) -> (i32, i32) {
    %c0_i32 = arith.constant 0 : i32
    %c0_i32_0 = arith.constant 0 : i32
    %c0_i32_1 = arith.constant 0 : i32
    return %c0_i32, %c0_i32_0 : i32, i32
  }
  func.func @transform_6(%arg0: i32) -> (i32, i32) {
    %c0_i32 = arith.constant 0 : i32
    %c0_i32_0 = arith.constant 0 : i32
    %c0_i32_1 = arith.constant 0 : i32
    return %c0_i32, %c0_i32_0 : i32, i32
  }
  func.func @transform_7(%arg0: i32) -> (i32, i32) {
    %c0_i32 = arith.constant 0 : i32
    %c0_i32_0 = arith.constant 0 : i32
    %c0_i32_1 = arith.constant 0 : i32
    return %c0_i32, %c0_i32_0 : i32, i32
  }
  func.func @transform_8(%arg0: i32) -> (i32, i32) {
    %c0_i32 = arith.constant 0 : i32
    %c0_i32_0 = arith.constant 0 : i32
    %c0_i32_1 = arith.constant 0 : i32
    return %c0_i32, %c0_i32_0 : i32, i32
  }
  func.func @transform_9(%arg0: i32) -> (i32, i32) {
    %c0_i32 = arith.constant 0 : i32
    %c0_i32_0 = arith.constant 0 : i32
    %c0_i32_1 = arith.constant 0 : i32
    return %c0_i32, %c0_i32_0 : i32, i32
  }
  func.func @transform_10(%arg0: i32) -> (i32, i32) {
    %c0_i32 = arith.constant 0 : i32
    %c0_i32_0 = arith.constant 0 : i32
    %c0_i32_1 = arith.constant 0 : i32
    return %c0_i32, %c0_i32_0 : i32, i32
  }
  func.func @transform_11(%arg0: i32) -> (i32, i32) {
    %c0_i32 = arith.constant 0 : i32
    %c0_i32_0 = arith.constant 0 : i32
    %c0_i32_1 = arith.constant 0 : i32
    return %c0_i32, %c0_i32_0 : i32, i32
  }
  func.func @transform_12(%arg0: i32) -> (i32, i32) {
    %c0_i32 = arith.constant 0 : i32
    %c0_i32_0 = arith.constant 0 : i32
    %c0_i32_1 = arith.constant 0 : i32
    return %c0_i32, %c0_i32_0 : i32, i32
  }
  func.func @transform_13(%arg0: i32) -> (i32, i32) {
    %c0_i32 = arith.constant 0 : i32
    %c0_i32_0 = arith.constant 0 : i32
    %c0_i32_1 = arith.constant 0 : i32
    return %c0_i32, %c0_i32_0 : i32, i32
  }
  func.func @transform_14(%arg0: i32) -> (i32, i32, i32) {
    %c0_i32 = arith.constant 0 : i32
    %c0_i32_0 = arith.constant 0 : i32
    %c0_i32_1 = arith.constant 0 : i32
    return %arg0, %c0_i32, %c0_i32_0 : i32, i32, i32
  }
}

</mosaic_0001>

<bundles_post_ra>
// kernel: impala_block.1
= control target key start
LH: loop header
LB: loop body
LE: loop exit
PB: predicated region body
PF: predicated region fallthrough
CT: control target
= control target key end

     0   :  { %s3173_s29 = smov 0   ;;  %s4306_s0 = inlined_call_operand.vmem [shape: f32[2,4,256], index: 0, kind: input, shape index: {}]   ;;  %s4307_s1 = inlined_call_operand.vmem [shape: f32[8,36], index: 1, kind: input, shape index: {}]   ;;  %s4308_s2 = inlined_call_operand.vmem [shape: f32[8,1], index: 2, kind: input, shape index: {}]   ;;  %s4309_s3 = inlined_call_operand.vmem [shape: f32[8,72], index: 3, kind: input, shape index: {}]   ;;  %s4310_s4 = inlined_call_operand.vmem [shape: f32[8,1], index: 4, kind: input, shape index: {}]   ;;  %s4311_s5 = inlined_call_operand.vmem [shape: f32[8,72], index: 5, kind: input, shape index: {}]   ;;  %s4312_s6 = inlined_call_operand.vmem [shape: f32[8,1], index: 6, kind: input, shape index: {}]   ;;  %s4313_s7 = inlined_call_operand.vmem [shape: f32[8,72], index: 7, kind: input, shape index: {}]   ;;  %s4314_s8 = inlined_call_operand.vmem [shape: f32[8,1], index: 8, kind: input, shape index: {}]   ;;  %s4315_s9 = inlined_call_operand.vmem [shape: f32[8,72], index: 9, kind: input, shape index: {}]   ;;  %s4316_s10 = inlined_call_operand.vmem [shape: f32[8,1], index: 10, kind: input, shape index: {}]   ;;  %s4317_s11 = inlined_call_operand.vmem [shape: f32[2,256], index: 11, kind: input, shape index: {}]   ;;  %s4318_s12 = inlined_call_operand.vmem [shape: f32[2,64], index: 12, kind: input, shape index: {}]   ;;  %s4319_s13 = inlined_call_operand.vmem [shape: f32[256,64], index: 13, kind: input, shape index: {}]   ;;  %s4320_s14 = inlined_call_operand.vmem [shape: f32[2,8,64], index: 14, kind: output, shape index: {}]  }
   0x1 LB: > { %s2391_s30 = sadd.s32 4294967295, %s3072_s29   ;;  %p2395_p0 = scmp.ge.s32.totalorder %s3072_s29, 1  ;;  %s3072_s29 = sphi %s3173_s29, %s24_s29  }
   0x2   : > { %p412_p1 = scmp.lt.s32.totalorder %s3072_s29, 3 }
   0x4   : > { %p413_p2 = pnand %p2395_p0, %p412_p1 }
   0x6   : > { %416 = sbr.rel (%p413_p2) target bundleno = 2953 (0xb89), region = 76 }
   0xd   : > { %p457_p3 = scmp.lt.s32.totalorder %s2391_s30, 1  ;;  %v488_v0 = vlaneseq  ;;  %v467_v2 = vld [vmem:[%s4317_s11] ss:$2 sm:$0x3]  ;;  %s3074_s23 = smov 17   ;;  %vm480_vm0 = vcmask 138240  }
   0xe   : > { %v2399_v4 = vld [vmem:[%s4317_s11 + $0x1] ss:$2 sm:$0x3]  ;;  %s4322_s24 = smov 16   ;;  %s4324_s25 = smov 2   ;;  %vm513_vm1 = vcmask 15360  }
   0xf   : > { %s4480_s30 = smov (!%p457_p3, %s2391_s30), 1  ;;  %v489_v1 = vshrl.u32 %v488_v0, 7  ;;  %s4323_s26 = smov 18   ;;  %vm525_vm2 = vcmask 130048   ;;  %vm537_vm3 = vcmask 146432   ;;  %vm549_vm4 = vcmask 261120  }
  0x10   : > { %s4321_s17 = sshll.u32 %s4480_s30, 3  ;;  %s3078_s27 = smov 32   ;;  %vm561_vm5 = vcmask 277504   ;;  %v4329_v59 = vmov 0.0   ;;  %v4353_v60 = vmov 0   ;;  %v473_v0 = vld [vmem:[%s4308_s2] sm:$0xff] }
  0x11   : > { %v3187_v3 = vsub.s32 0, %v489_v1  ;;  %v3192_v5 = vsub.s32 1, %v489_v1  ;;  %s461_s22 = scalar_lea.vmem %s4306_s0, %s4321_s17  ;;  %s3079_s28 = smov 34   ;;  %767 = vmatprep.mubr.f32.mxu0 %v4329_v59  ;;  %3061 = vset.pattern.permute.xlu1 %v4353_v60  ;;  %vm622_vm6 = vcmask 908288   ;;  %vm580_vm7 = vcmask 1039360  }
  0x12   : > { %v466_v6 = vld [vmem:[%s461_s22] sm:$0xff]  ;;  %s3080_s15 = smov 111   ;;  %s3081_s16 = smov 127   ;;  %3062 = vset.pattern.permute.xlu0 %v4353_v60  ;;  %vm594_vm8 = vcmask 1031168   ;;  %vm681_vm9 = vcmask 1043456   ;;  %vm639_vm10 = vcmask 900096  }
  0x13   : > { %v3200_v7 = vrot.slane %v467_v2, %v3187_v3  ;;  %476 = vrot.lane.b32.xlu0 %v466_v6, %s3074_s23  ;;  %v504_v8 = vrot.slane %v2399_v4, %v3187_v3  ;;  %v3207_v9 = vrot.slane %v467_v2, %v3192_v5  ;;  %v475_v10 = vcombine.high %v466_v6, %v466_v6  ;;  %s3082_s18 = smov 126   ;;  %s3083_s19 = smov 112  }
  0x14   : > { %v508_v11 = vrot.slane %v2399_v4, %v3192_v5  ;;  %s4327_s20 = smov 95   ;;  %s3085_s21 = smov 96   ;;  %vm653_vm11 = vcmask 785408   ;;  %vm611_vm12 = vcmask 916480   ;;  %vm664_vm13 = vcmask 777216  }
  0x15   : > { %521 = vrot.lane.b32.xlu1 %v3200_v7, %s4322_s24  ;;  %s3086_s22 = smov 110   ;;  %vm678_vm14 = vcmask 769024   ;;  %vm695_vm15 = vcmask 293888   ;;  %s4394_s17 = smov 94  }
  0x17   : > { %509 = vrot.lane.b32.xlu0 %v504_v8, %s4324_s25 }
  0x19   : > { %523 = vrot.lane.b32.xlu1 %v3207_v9, %s4322_s24  ;;  %s3092_s24 = smov 8  }
  0x1b   : > { %478 = vrot.lane.b32.xlu0 %v475_v10, %s3074_s23 }
  0x1d   : > { %511 = vrot.lane.b32.xlu1 %v508_v11, %s4324_s25  ;;  %s4476_s25 = smov 16  }
  0x1f   : > { %533 = vrot.lane.b32.xlu0 %v504_v8, %s4323_s26 }
  0x21   : > { %535 = vrot.lane.b32.xlu1 %v508_v11, %s4323_s26  ;;  %s3094_s26 = smov 120  }
  0x23   : > { %545 = vrot.lane.b32.xlu0 %v3200_v7, %s3078_s27 }
  0x25   : > { %547 = vrot.lane.b32.xlu1 %v3207_v9, %s3078_s27  ;;  %s4325_s27 = smov 94  }
  0x27   : > { %557 = vrot.lane.b32.xlu0 %v504_v8, %s3079_s28 }
  0x29   : > { %559 = vrot.lane.b32.xlu1 %v508_v11, %s3079_s28 }
  0x85   : > { %v477_v12 = vpop.permute.xlu0 %476 }
  0x86   : > { %v3220_v13 = vsel %vm480_vm0, 0.0, %v477_v12 }
  0x87   : > { %v522_v14 = vpop.permute.xlu1 %521  ;;  %616 = vrot.lane.b32.xlu0 %v3220_v13, %s3080_s15  ;;  %v571_v15 = vrot.slane %v3220_v13, 4 }
  0x88   : > { %v530_v30 = vmul.f32 %v522_v14, %v3220_v13 }
  0x89   : > { %v510_v16 = vpop.permute.xlu0 %509  ;;  %574 = vrot.lane.b32.xlu1 %v571_v15, %s3081_s16 }
  0x8a   : > { %v518_v17 = vmul.f32 %v510_v16, %v3220_v13  ;;  %v602_v37 = vrot.slane %v530_v30, 4 }
  0x8b   : > { %v524_v18 = vpop.permute.xlu1 %523 }
  0x8c   : > { %588 = vrot.lane.b32.xlu0 %v518_v17, %s3082_s18  ;;  %v526_v34 = vsel %vm525_vm2, %v522_v14, %v524_v18  ;;  %v498_v17 = vmul.f32 %v3200_v7, %v3220_v13 }
  0x8d   : > { %v479_v19 = vpop.permute.xlu0 %478 }
  0x8e   : > { %v3231_v20 = vsel %vm480_vm0, %v477_v12, %v479_v19  ;;  %v3234_v21 = vsel %vm480_vm0, %v479_v19, 0.0 }
  0x8f   : > { %v512_v22 = vpop.permute.xlu1 %511  ;;  %v3026_v25 = vpack.i.bf16 %v3234_v21, %v3231_v20  ;;  %v572_v26 = vrot.slane %v3231_v20, 4  ;;  %v573_v28 = vrot.slane %v3234_v21, 4  ;;  %v531_v38 = vmul.f32 %v526_v34, %v3231_v20 }
  0x90   : > { %v514_v23 = vsel %vm513_vm1, %v510_v16, %v512_v22  ;;  %v520_v24 = vmul.f32 %v512_v22, %v3234_v21  ;;  %v532_v39 = vmul.f32 %v524_v18, %v3234_v21 }
  0x91   : > { %v519_v27 = vmul.f32 %v514_v23, %v3231_v20  ;;  %3027 = vrot.lane.b32.xlu0 %v3026_v25, %s3080_s15  ;;  %v534_v29 = vpop.permute.xlu0 %533  ;;  %v3031_v33 = vpack.i.bf16 %v573_v28, %v572_v26  ;;  %v603_v48 = vrot.slane %v531_v38, 4 }
  0x92   : > { %v542_v44 = vmul.f32 %v534_v29, %v3220_v13  ;;  %v604_v49 = vrot.slane %v532_v39, 4 }
  0x93   : > { %v3036_v31 = vpack.i.bf16 %v520_v24, %v519_v27  ;;  %v536_v32 = vpop.permute.xlu1 %535 }
  0x94   : > { %v538_v40 = vsel %vm537_vm3, %v534_v29, %v536_v32  ;;  %v544_v45 = vmul.f32 %v536_v32, %v3234_v21  ;;  %v630_v50 = vrot.slane %v542_v44, 4  ;;  %v3051_v53 = vpack.i.bf16 %v604_v49, %v603_v48 }
  0x95   : > { %3037 = vrot.lane.b32.xlu1 %v3036_v31, %s3082_s18  ;;  %3032 = vrot.lane.b32.xlu0 %v3031_v33, %s3081_s16  ;;  %v546_v35 = vpop.permute.xlu0 %545  ;;  %v543_v46 = vmul.f32 %v538_v40, %v3231_v20 }
  0x96   : > { %v632_v52 = vrot.slane %v544_v45, 4  ;;  %v554_v56 = vmul.f32 %v546_v35, %v3220_v13 }
  0x97   : > { %v548_v36 = vpop.permute.xlu1 %547  ;;  %v631_v51 = vrot.slane %v543_v46, 4 }
  0x98   : > { %v550_v41 = vsel %vm549_vm4, %v546_v35, %v548_v36  ;;  %v556_v42 = vmul.f32 %v548_v36, %v3234_v21 }
  0x99   : > { %v555_v43 = vmul.f32 %v550_v41, %v3231_v20  ;;  %605 = vrot.lane.b32.xlu1 %v602_v37, %s3083_s19  ;;  %v558_v54 = vpop.permute.xlu0 %557  ;;  %v3056_v57 = vpack.i.bf16 %v632_v52, %v631_v51 }
  0x9a   : > { %v566_v62 = vmul.f32 %v558_v54, %v3220_v13 }
  0x9b   : > { %v3041_v47 = vpack.i.bf16 %v556_v42, %v555_v43  ;;  %v560_v55 = vpop.permute.xlu1 %559 }
  0x9c   : > { %v562_v58 = vsel %vm561_vm5, %v558_v54, %v560_v55  ;;  %v568_v63 = vmul.f32 %v560_v55, %v3234_v21  ;;  %v499_v21 = vmul.f32 %v3207_v9, %v3231_v20 }
  0x9d   : > { %3047 = vrot.lane.b32.xlu1 %v3031_v33, %s4327_s20  ;;  %3042 = vrot.lane.b32.xlu0 %v3041_v47, %s3085_s21  ;;  %v567_v61 = vmul.f32 %v562_v58, %v3231_v20 }
  0xa1   : > { %633 = vrot.lane.b32.xlu1 %v630_v50, %s3086_s22  ;;  %3052 = vrot.lane.b32.xlu0 %v3051_v53, %s3083_s19 }
  0xa5   : > { %3057 = vrot.lane.b32.xlu1 %v3056_v57, %s3086_s22  ;;  %647 = vrot.lane.b32.xlu0 %v554_v56, %s3085_s21 }
  0xa9   : > { %658 = vrot.lane.b32.xlu1 %v571_v15, %s4327_s20  ;;  %674 = vrot.lane.b32.xlu0 %v567_v61, %s4325_s27  ;;  %s3090_s20 = smov 10  }
  0xad   : > { %676 = vrot.lane.b32.xlu1 %v568_v63, %s4325_s27  ;;  %672 = vrot.lane.b32.xlu0 %v566_v62, %s4325_s27  ;;  %s4384_s27 = smov 95  }
  0xb1   : > { %692 = vperm.xlu1 %3061, %v473_v0  }
  0xf9   : > { %v617_v1 = vpop.permute.xlu0 %616 }
  0xfb   : > { %v575_v4 = vpop.permute.xlu1 %574 }
  0xfe   : > { %v589_v2 = vpop.permute.xlu0 %588 }
 0x103   : > { %v3028_v6 = vpop.permute.xlu0 %3027 }
 0x104   : > { %v3030_v30 = vunpack.i.h.bf16 %v3028_v6  ;;  %v3029_v31 = vunpack.i.l.bf16 %v3028_v6 }
 0x106   : > { %v624_v46 = vsel %vm622_vm6, %v3029_v31, %v3030_v30  ;;  %v623_v53 = vsel %vm622_vm6, %v617_v1, %v3029_v31  ;;  %v472_v1 = vld [vmem:[%s4307_s1] sm:$0xff]  ;;  %v3377_v30 = vld [vmem:[%s4319_s13 + $0x10] sm:$0xff] }
 0x107   : > { %v3038_v8 = vpop.permute.xlu1 %3037  ;;  %v3033_v10 = vpop.permute.xlu0 %3032 }
 0x108   : > { %v3035_v12 = vunpack.i.h.bf16 %v3033_v10  ;;  %v3034_v14 = vunpack.i.l.bf16 %v3033_v10  ;;  %v3040_v18 = vunpack.i.h.bf16 %v3038_v8  ;;  %v3039_v19 = vunpack.i.l.bf16 %v3038_v8 }
 0x10a   : > { %v582_v26 = vsel %vm580_vm7, %v3034_v14, %v3035_v12  ;;  %v581_v27 = vsel %vm580_vm7, %v575_v4, %v3034_v14  ;;  %v596_v32 = vsel %vm594_vm8, %v3039_v19, %v3040_v18  ;;  %v595_v33 = vsel %vm594_vm8, %v589_v2, %v3039_v19  ;;  %v3314_v12 = vld [vmem:[%s4319_s13 + $0x80] sm:$0xff]  ;;  %v3319_v14 = vld [vmem:[%s4319_s13 + $0x88] sm:$0xff] }
 0x10b   : > { %v606_v11 = vpop.permute.xlu1 %605  ;;  %v683_v20 = vsel %vm681_vm9, %v499_v21, %v582_v26  ;;  %v682_v38 = vsel %vm681_vm9, %v498_v17, %v581_v27  ;;  %v3326_v17 = vld [vmem:[%s4319_s13] sm:$0xff]  ;;  %v3331_v18 = vld [vmem:[%s4319_s13 + $0x8] sm:$0xff] }
 0x10c   : > { %v953_v19 = vand.u32 4294901760, %v3326_v17  ;;  %v956_v21 = vand.u32 4294901760, %v3331_v18 }
 0x10e   : > { %v3353_v26 = vsub.f32 %v3331_v18, %v956_v21 }
 0x10f   : > { %v3048_v15 = vpop.permute.xlu1 %3047  ;;  %v3043_v16 = vpop.permute.xlu0 %3042 }
 0x110   : > { %v3045_v22 = vunpack.i.h.bf16 %v3043_v16  ;;  %v3044_v23 = vunpack.i.l.bf16 %v3043_v16  ;;  %v3050_v28 = vunpack.i.h.bf16 %v3048_v15  ;;  %v3049_v7 = vunpack.i.l.bf16 %v3048_v15 }
 0x111   : > { %v1001_v15 = vand.u32 4294901760, %v3314_v12  ;;  %v1004_v16 = vand.u32 4294901760, %v3319_v14 }
 0x112   : > { %v655_v40 = vsel %vm653_vm11, %v3044_v23, %v3045_v22  ;;  %v666_v44 = vsel %vm664_vm13, %v3049_v7, %v3050_v28 }
 0x113   : > { %v634_v24 = vpop.permute.xlu1 %633  ;;  %v3053_v25 = vpop.permute.xlu0 %3052  ;;  %v689_v52 = vsel %vm681_vm9, %v655_v40, %v666_v44  ;;  %v3338_v22 = vsub.f32 %v3314_v12, %v1001_v15  ;;  %v3539_v12 = vpack.c.bf16 %v956_v21, %v953_v19 }
 0x114   : > { %v3055_v13 = vunpack.i.h.bf16 %v3053_v25  ;;  %v3054_v29 = vunpack.i.l.bf16 %v3053_v25  ;;  %v3348_v25 = vsub.f32 %v3326_v17, %v953_v19 }
 0x115   : > { %4382 = vst [vmem:[#allocation2_spill] sm:$0xff] %v3338_v22  ;;  %v4351_v28 = vand.u32 4294901760, %v3338_v22 }
 0x116   : > { %v613_v9 = vsel %vm611_vm12, %v3054_v29, %v3055_v13  ;;  %v612_v34 = vsel %vm611_vm12, %v606_v11, %v3054_v29  ;;  %v3363_v13 = vld [vmem:[%s4319_s13 + $0x90] sm:$0xff]  ;;  %v3368_v29 = vld [vmem:[%s4319_s13 + $0x98] sm:$0xff] }
 0x117   : > { %v3058_v35 = vpop.permute.xlu1 %3057  ;;  %v648_v36 = vpop.permute.xlu0 %647  ;;  %v685_v37 = vsel %vm681_vm9, %v596_v32, %v613_v9  ;;  %v684_v39 = vsel %vm681_vm9, %v595_v33, %v612_v34  ;;  %v1180_v31 = vsub.f32 %v3338_v22, %v4351_v28  ;;  %v4344_v9 = vand.u32 4294901760, %v3348_v25 }
 0x118   : > { %v3060_v41 = vunpack.i.h.bf16 %v3058_v35  ;;  %v3059_v42 = vunpack.i.l.bf16 %v3058_v35  ;;  %v2746_v43 = vpack.c.bf16 %v685_v37, %v683_v20  ;;  %v2748_v45 = vpack.c.bf16 %v684_v39, %v682_v38  ;;  %v3389_v20 = vld [vmem:[%s4319_s13 + $0x18] sm:$0xff] }
 0x119   : > { %v654_v54 = vsel %vm653_vm11, %v648_v36, %v3044_v23  ;;  %v3343_v23 = vsub.f32 %v3319_v14, %v1004_v16  ;;  %v4343_v33 = vand.u32 4294901760, %v3353_v26  ;;  %v1007_v34 = vand.u32 4294901760, %v3363_v13  ;;  %v3397_v36 = vld [vmem:[%s4319_s13 + $0xa0] sm:$0xff] }
 0x11a   : > { %v640_v47 = vsel %vm639_vm10, %v634_v24, %v3059_v42  ;;  %v641_v48 = vsel %vm639_vm10, %v3059_v42, %v3060_v41  ;;  %2747 = vmatprep.subr.bf16.mxu0 %v2746_v43  ;;  %v1010_v35 = vand.u32 4294901760, %v3368_v29  ;;  %v1181_v38 = vand.u32 4294901760, %v1180_v31 }
 0x11b   : > { %v659_v49 = vpop.permute.xlu1 %658  ;;  %v675_v50 = vpop.permute.xlu0 %674  ;;  %2749 = vmatpush1.bf16.msra.mxu0 %v2748_v45  ;;  %v687_v51 = vsel %vm681_vm9, %v624_v46, %v641_v48  ;;  %v686_v58 = vsel %vm681_vm9, %v623_v53, %v640_v47  ;;  %4383 = vst [vmem:[#allocation3_spill] sm:$0xff] %v3343_v23  ;;  %v1068_v40 = vsub.f32 %v3348_v25, %v4344_v9  ;;  %v959_v41 = vand.u32 4294901760, %v3377_v30  ;;  %v3424_v46 = vld [vmem:[%s4319_s13 + $0xa8] sm:$0xff] }
 0x11c   : > { %v665_v55 = vsel %vm664_vm13, %v659_v49, %v3049_v7  ;;  %v2750_v56 = vpack.c.bf16 %v689_v52, %v687_v51  ;;  %v4346_v7 = vand.u32 4294901760, %v3343_v23  ;;  %v1075_v42 = vsub.f32 %v3353_v26, %v4343_v33 }
 0x11d   : > { %v688_v57 = vsel %vm681_vm9, %v654_v54, %v665_v55  ;;  %v3413_v43 = vsub.f32 %v3363_v13, %v1007_v34  ;;  %v3418_v44 = vsub.f32 %v3368_v29, %v1010_v35  ;;  %v962_v45 = vand.u32 4294901760, %v3389_v20 }
 0x11e   : > { %2751 = vmatprep.subr.bf16.mxu0 %v2750_v56  ;;  %v2752_v61 = vpack.c.bf16 %v688_v57, %v686_v58  ;;  %v1187_v32 = vsub.f32 %v3343_v23, %v4346_v7  ;;  %v1069_v48 = vand.u32 4294901760, %v1068_v40  ;;  %v3429_v49 = vsub.f32 %v3377_v30, %v959_v41 }
 0x11f   : > { %v677_v62 = vpop.permute.xlu1 %676  ;;  %v673_v0 = vpop.permute.xlu0 %672  ;;  %v1076_v52 = vand.u32 4294901760, %v1075_v42  ;;  %v4342_v53 = vand.u32 4294901760, %v3413_v43  ;;  %v4341_v54 = vand.u32 4294901760, %v3418_v44  ;;  %v3441_v56 = vsub.f32 %v3389_v20, %v962_v45 }
 0x120   : > { %v680_v63 = vsel %vm678_vm14, %v675_v50, %v677_v62  ;;  %2753 = vmatpush1.bf16.msra.mxu0 %v2752_v61  ;;  %v679_v2 = vsel %vm678_vm14, %v673_v0, %v675_v50  ;;  %v1188_v39 = vand.u32 4294901760, %v1187_v32  ;;  %v1013_v50 = vand.u32 4294901760, %v3397_v36  ;;  %v3452_v61 = vld [vmem:[%s4319_s13 + $0x20] sm:$0xff]  ;;  %v3457_v62 = vld [vmem:[%s4319_s13 + $0x28] sm:$0xff] }
 0x121   : > { %2400 = vmatprep.subr.msk.mxu0 %vm681_vm9, %v680_v63  ;;  %v4337_v55 = vand.u32 4294901760, %v3429_v49  ;;  %v1016_v57 = vand.u32 4294901760, %v3424_v46  ;;  %v2788_v0 = vpack.c.bf16 %v1076_v52, %v1069_v48  ;;  %v965_v32 = vand.u32 4294901760, %v3452_v61 }
 0x122   : > { %v2786_v47 = vpack.c.bf16 %v1188_v39, %v1181_v38  ;;  %v3447_v58 = vsub.f32 %v3397_v36, %v1013_v50  ;;  %v3565_v19 = vpack.c.bf16 %v1010_v35, %v1007_v34  ;;  %v3589_v34 = vpack.c.bf16 %v962_v45, %v959_v41  ;;  %v3594_v35 = vld [vmem:[%s4319_s13 + $0x40] sm:$0xff] }
 0x123   : > { %v3508_v52 = vsub.f32 %v3452_v61, %v965_v32  ;;  %v3673_v61 = vld [vmem:[%s4319_s13 + $0xd8] sm:$0xff] }
 0x124   : > { %2401 = vmatpush1.msk.msra.mxu0 %vm681_vm9, %v679_v2  ;;  %v1201_v2 = vsub.f32 %v3418_v44, %v4341_v54  ;;  %vm1891_vm9 = vcmask 588800  }
 0x125   : > { %2402 = vmatmul.mubr.msk.f32.vlgmr.msra.gmra.mrb[0].mxu0 %vm695_vm15, %v472_v1  ;;  %2787 = vmatprep.subr.bf16.mxu0 %v2786_v47  ;;  %v1194_v1 = vsub.f32 %v3413_v43, %v4342_v53  ;;  %v3499_v47 = vld [vmem:[%s4319_s13 + $0xb8] sm:$0xff]  ;;  %v4333_v14 = vand.u32 4294901760, %v3508_v52 }
 0x126   : > { %2789 = vmatpush3.bf16.msra.mxu0 %v2788_v0  ;;  %v1202_v31 = vand.u32 4294901760, %v1201_v2  ;;  %v3519_v2 = vld [vmem:[%s4319_s13 + $0x30] sm:$0xff] }
 0x127   : > { %v971_v17 = vand.u32 4294901760, %v3519_v2  ;;  %v1096_v18 = vsub.f32 %v3508_v52, %v4333_v14 }
 0x130   : > { %v693_v4 = vpop.permute.xlu1 %692 }
 0x1f8   : > { %v769_v6 = vpop.f32.mrb[0].mxu0 }
 0x1f9   : > { %v770_v8 = vadd.f32 %v769_v6, %v693_v4  ;;  %v771_v10 = vpop.f32.mrb[1].mxu0  ;;  %v4336_v6 = vand.u32 4294901760, %v3441_v56 }
 0x1fa   : > { %v772_v11 = vadd.f32 %v771_v10, %v693_v4  ;;  %v1082_v4 = vsub.f32 %v3429_v49, %v4337_v55  ;;  %v3480_v10 = vsub.f32 %v3424_v46, %v1016_v57 }
 0x1fb   : > { %808 = vrot.lane.b32.xlu0 %v770_v8, %s3074_s23  ;;  %v4331_v8 = vand.u32 4294901760, %v3447_v58  ;;  %v1089_v39 = vsub.f32 %v3441_v56, %v4336_v6 }
 0x1fc   : > { %810 = vrot.lane.b32.xlu1 %v772_v11, %s3074_s23  ;;  %v3485_v11 = vld [vmem:[%s4319_s13 + $0xb0] sm:$0xff]  ;;  %v1083_v38 = vand.u32 4294901760, %v1082_v4  ;;  %v4335_v42 = vand.u32 4294901760, %v3480_v10 }
 0x1fd   : > { %v1208_v40 = vsub.f32 %v3447_v58, %v4331_v8  ;;  %v1090_v4 = vand.u32 4294901760, %v1089_v39  ;;  %v3533_v8 = vld [vmem:[%s4319_s13 + $0x38] sm:$0xff] }
 0x1fe   : > { %v1215_v59 = vsub.f32 %v3480_v10, %v4335_v42  ;;  %v974_v21 = vand.u32 4294901760, %v3533_v8  ;;  %v977_v42 = vand.u32 4294901760, %v3594_v35 }
 0x1ff   : > { %v2792_v39 = vpack.c.bf16 %v1090_v4, %v1083_v38  ;;  %v3571_v38 = vld [vmem:[%s4319_s13 + $0xc0] sm:$0xff]  ;;  %v3576_v4 = vld [vmem:[%s4319_s13 + $0xc8] sm:$0xff] }
 0x200   : > { %v3605_v30 = vsub.f32 %v3533_v8, %v974_v21  ;;  %v1025_v45 = vand.u32 4294901760, %v3571_v38 }
 0x26d   : > { %v809_v24 = vpop.permute.xlu0 %808 }
 0x26e   : > { %v3356_v27 = vsel %vm480_vm0, -inf, %v809_v24  ;;  %v811_v37 = vpop.permute.xlu1 %810 }
 0x26f   : > { %858 = vrot.lane.b32.xlu1 %v3356_v27, %s3082_s18  ;;  %834 = vrot.lane.b32.xlu0 %v3356_v27, %s3081_s16  ;;  %v3433_v51 = vsel %vm480_vm0, %v809_v24, %v811_v37  ;;  %v3460_v63 = vsel %vm480_vm0, %v811_v37, -inf  ;;  %v1195_v24 = vand.u32 4294901760, %v1194_v1  ;;  %v968_v37 = vand.u32 4294901760, %v3457_v62 }
 0x270   : > { %v1019_v1 = vand.u32 4294901760, %v3485_v11 }
 0x271   : > { %v2790_v48 = vpack.c.bf16 %v1202_v31, %v1195_v24  ;;  %v3513_v0 = vsub.f32 %v3457_v62, %v968_v37  ;;  %v3525_v24 = vpack.c.bf16 %v1004_v16, %v1001_v15  ;;  %v1209_v31 = vand.u32 4294901760, %v1208_v40 }
 0x272   : > { %v1022_v16 = vand.u32 4294901760, %v3499_v47  ;;  %v1216_v40 = vand.u32 4294901760, %v1215_v59 }
 0x273   : > { %886 = vrot.lane.b32.xlu1 %v3356_v27, %s3080_s15  ;;  %872 = vrot.lane.b32.xlu0 %v3356_v27, %s3083_s19  ;;  %v4332_v15 = vand.u32 4294901760, %v3513_v0 }
 0x274   : > { %2791 = vmatprep.subr.bf16.mxu0 %v2790_v48  ;;  %2755 = vmatprep.subr.bf16.mxu1 %v3525_v24  ;;  %v3548_v48 = vsub.f32 %v3485_v11, %v1019_v1  ;;  %v3583_v29 = vsub.f32 %v3499_v47, %v1022_v16 }
 0x275   : > { %v1103_v59 = vsub.f32 %v3513_v0, %v4332_v15  ;;  %2793 = vmatpush3.bf16.msra.mxu0 %v2792_v39  ;;  %v2794_v15 = vpack.c.bf16 %v1216_v40, %v1209_v31  ;;  %2757 = vmatpush3.bf16.msra.mxu1 %v3539_v12  ;;  %v1097_v31 = vand.u32 4294901760, %v1096_v18  ;;  %v3600_v40 = vsub.f32 %v3519_v2, %v971_v17 }
 0x276   : > { %v4334_v13 = vand.u32 4294901760, %v3548_v48  ;;  %2759 = vmatprep.subr.bf16.mxu1 %v3565_v19  ;;  %v4338_v41 = vand.u32 4294901760, %v3583_v29  ;;  %v1028_v18 = vand.u32 4294901760, %v3576_v4 }
 0x277   : > { %912 = vrot.lane.b32.xlu1 %v3356_v27, %s3085_s21  ;;  %898 = vrot.lane.b32.xlu0 %v3356_v27, %s3086_s22  ;;  %v1104_v39 = vand.u32 4294901760, %v1103_v59  ;;  %v4339_v14 = vand.u32 4294901760, %v3600_v40 }
 0x278   : > { %2795 = vmatprep.subr.bf16.mxu0 %v2794_v15  ;;  %v1222_v20 = vsub.f32 %v3548_v48, %v4334_v13  ;;  %v4340_v15 = vand.u32 4294901760, %v3605_v30  ;;  %v3622_v13 = vld [vmem:[%s4319_s13 + $0x48] sm:$0xff]  ;;  %v1229_v55 = vsub.f32 %v3583_v29, %v4338_v41  ;;  %v3654_v46 = vsub.f32 %v3576_v4, %v1028_v18 }
 0x279   : > { %v2796_v59 = vpack.c.bf16 %v1104_v39, %v1097_v31  ;;  %2761 = vmatpush3.bf16.msra.mxu1 %v3589_v34  ;;  %v3633_v31 = vpack.c.bf16 %v1016_v57, %v1013_v50  ;;  %v3638_v39 = vsub.f32 %v3571_v38, %v1025_v45  ;;  %v1110_v41 = vsub.f32 %v3600_v40, %v4339_v14 }
 0x27a   : > { %v1223_v6 = vand.u32 4294901760, %v1222_v20  ;;  %v3643_v20 = vld [vmem:[%s4319_s13 + $0xd0] sm:$0xff]  ;;  %v1117_v36 = vsub.f32 %v3605_v30, %v4340_v15  ;;  %v3660_v50 = vpack.c.bf16 %v968_v37, %v965_v32  ;;  %v1230_v57 = vand.u32 4294901760, %v1229_v55 }
 0x27b   : > { %838 = vrot.lane.b32.xlu1 %v3460_v63, %s3081_s16  ;;  %926 = vrot.lane.b32.xlu0 %v3356_v27, %s4384_s27  ;;  %4385 = vst [vmem:[#allocation4_spill] sm:$0xff] %v3633_v31  ;;  %v980_v14 = vand.u32 4294901760, %v3622_v13  ;;  %v3668_v15 = vsub.f32 %v3594_v35, %v977_v42  ;;  %v1111_v55 = vand.u32 4294901760, %v1110_v41  ;;  %v4349_v32 = vand.u32 4294901760, %v3654_v46  ;;  %v3692_v41 = vld [vmem:[%s4319_s13 + $0x50] sm:$0xff] }
 0x27c   : > { %2797 = vmatpush3.bf16.msra.mxu0 %v2796_v59  ;;  %4386 = vst [vmem:[#allocation5_spill] sm:$0xff] %v3660_v50  ;;  %2763 = vmatprep.subr.bf16.mxu1 %v3633_v31  ;;  %v4345_v59 = vand.u32 4294901760, %v3638_v39  ;;  %v1118_v62 = vand.u32 4294901760, %v1117_v36  ;;  %v1031_v37 = vand.u32 4294901760, %v3643_v20  ;;  %v2798_v54 = vpack.c.bf16 %v1230_v57, %v1223_v6  ;;  %v804_v35 = vld [vmem:[%s4319_s13 + $0xf0] sm:$0xff] }
 0x27d   : > { %2765 = vmatpush3.bf16.msra.mxu1 %v3660_v50  ;;  %v4347_v33 = vand.u32 4294901760, %v3668_v15  ;;  %v3687_v9 = vsub.f32 %v3622_v13, %v980_v14  ;;  %v1243_v6 = vsub.f32 %v3654_v46, %v4349_v32  ;;  %v3701_v57 = vpack.c.bf16 %v1022_v16, %v1019_v1  ;;  %v3707_v13 = vld [vmem:[%s4319_s13 + $0x58] sm:$0xff]  ;;  %v3735_v16 = vld [vmem:[%s4319_s13 + $0xe0] sm:$0xff] }
 0x27e   : > { %v1236_v53 = vsub.f32 %v3638_v39, %v4345_v59  ;;  %v2800_v36 = vpack.c.bf16 %v1118_v62, %v1111_v55  ;;  %v1034_v59 = vand.u32 4294901760, %v3673_v61  ;;  %2799 = vmatprep.subr.bf16.mxu0 %v2798_v54  ;;  %v3716_v11 = vsub.f32 %v3643_v20, %v1031_v37 }
 0x27f   : > { %860 = vrot.lane.b32.xlu1 %v3433_v51, %s3082_s18  ;;  %836 = vrot.lane.b32.xlu0 %v3433_v51, %s3081_s16  ;;  %4387 = vst [vmem:[#allocation6_spill] sm:$0xff] %v3701_v57  ;;  %v1124_v55 = vsub.f32 %v3668_v15, %v4347_v33  ;;  %v4348_v62 = vand.u32 4294901760, %v3687_v9  ;;  %v1244_v47 = vand.u32 4294901760, %v1243_v6  ;;  %v3729_v54 = vpack.c.bf16 %v974_v21, %v971_v17  ;;  %v3746_v17 = vld [vmem:[%s4319_s13 + $0xe8] sm:$0xff] }
 0x280   : > { %v1237_v7 = vand.u32 4294901760, %v1236_v53  ;;  %v3723_v53 = vsub.f32 %v3673_v61, %v1034_v59  ;;  %v983_v1 = vand.u32 4294901760, %v3692_v41  ;;  %2801 = vmatpush3.bf16.msra.mxu0 %v2800_v36  ;;  %2767 = vmatprep.subr.bf16.mxu1 %v3701_v57  ;;  %v4350_v2 = vand.u32 4294901760, %v3716_v11 }
 0x281   : > { %4388 = vst [vmem:[#allocation7_spill] sm:$0xff] %v3729_v54  ;;  %v1125_v33 = vand.u32 4294901760, %v1124_v55  ;;  %v1131_v61 = vsub.f32 %v3687_v9, %v4348_v62  ;;  %v986_v8 = vand.u32 4294901760, %v3707_v13  ;;  %2769 = vmatpush3.bf16.msra.mxu1 %v3729_v54  ;;  %v3757_v55 = vpack.c.bf16 %v1028_v18, %v1025_v45 }
 0x282   : > { %v2802_v21 = vpack.c.bf16 %v1244_v47, %v1237_v7  ;;  %v4352_v6 = vand.u32 4294901760, %v3723_v53  ;;  %v3751_v36 = vsub.f32 %v3692_v41, %v983_v1  ;;  %v1250_v32 = vsub.f32 %v3716_v11, %v4350_v2  ;;  %v3769_v41 = vld [vmem:[%s4319_s13 + $0x60] sm:$0xff] }
 0x283   : > { %876 = vrot.lane.b32.xlu1 %v3460_v63, %s3083_s19  ;;  %862 = vrot.lane.b32.xlu0 %v3460_v63, %s3082_s18  ;;  %4389 = vst [vmem:[#allocation8_spill] sm:$0xff] %v3757_v55  ;;  %v1132_v62 = vand.u32 4294901760, %v1131_v61  ;;  %v3763_v7 = vsub.f32 %v3707_v13, %v986_v8  ;;  %v1037_v47 = vand.u32 4294901760, %v3735_v16  ;;  %v1040_v45 = vand.u32 4294901760, %v3746_v17  ;;  %v787_v13 = vld [vmem:[%s4319_s13 + $0x68] sm:$0xff] }
 0x284   : > { %v1257_v38 = vsub.f32 %v3723_v53, %v4352_v6  ;;  %v4356_v4 = vand.u32 4294901760, %v3751_v36  ;;  %v3782_v18 = vpack.c.bf16 %v980_v14, %v977_v42  ;;  %2803 = vmatprep.subr.bf16.mxu0 %v2802_v21  ;;  %v1251_v2 = vand.u32 4294901760, %v1250_v32  ;;  %2771 = vmatprep.subr.bf16.mxu1 %v3757_v55  ;;  %v805_v21 = vld [vmem:[%s4319_s13 + $0xf8] sm:$0xff] }
 0x285   : > { %v2804_v61 = vpack.c.bf16 %v1132_v62, %v1125_v33  ;;  %v4355_v28 = vand.u32 4294901760, %v3763_v7  ;;  %v3790_v6 = vsub.f32 %v3735_v16, %v1037_v47  ;;  %v3796_v14 = vsub.f32 %v3746_v17, %v1040_v45 }
 0x286   : > { %4390 = vst [vmem:[#allocation9_spill] sm:$0xff] %v3782_v18  ;;  %v1258_v60 = vand.u32 4294901760, %v1257_v38  ;;  %v1138_v42 = vsub.f32 %v3751_v36, %v4356_v4  ;;  %2773 = vmatpush3.bf16.msra.mxu1 %v3782_v18  ;;  %v989_v33 = vand.u32 4294901760, %v3769_v41  ;;  %v992_v16 = vand.u32 4294901760, %v787_v13 }
 0x287   : > { %888 = vrot.lane.b32.xlu1 %v3433_v51, %s3080_s15  ;;  %874 = vrot.lane.b32.xlu0 %v3433_v51, %s3083_s19  ;;  %v1145_v32 = vsub.f32 %v3763_v7, %v4355_v28  ;;  %v4359_v62 = vand.u32 4294901760, %v3790_v6  ;;  %v3809_v17 = vpack.c.bf16 %v1034_v59, %v1031_v37  ;;  %v4366_v28 = vand.u32 4294901760, %v3796_v14 }
 0x288   : > { %2805 = vmatpush3.bf16.msra.mxu0 %v2804_v61  ;;  %v2806_v38 = vpack.c.bf16 %v1258_v60, %v1251_v2  ;;  %v1139_v61 = vand.u32 4294901760, %v1138_v42  ;;  %v3820_v4 = vsub.f32 %v3769_v41, %v989_v33  ;;  %v3825_v37 = vsub.f32 %v787_v13, %v992_v16  ;;  %v788_v60 = vld [vmem:[%s4319_s13 + $0x70] sm:$0xff]  ;;  %v789_v13 = vld [vmem:[%s4319_s13 + $0x78] sm:$0xff] }
 0x289   : > { %4391 = vst [vmem:[#allocation10_spill] sm:$0xff] %v3809_v17  ;;  %v1146_v20 = vand.u32 4294901760, %v1145_v32  ;;  %v1264_v59 = vsub.f32 %v3790_v6, %v4359_v62  ;;  %2775 = vmatprep.subr.bf16.mxu1 %v3809_v17  ;;  %v1043_v18 = vand.u32 4294901760, %v804_v35  ;;  %v1271_v2 = vsub.f32 %v3796_v14, %v4366_v28 }
 0x28a   : > { %4392 = vst [vmem:[#allocation11_spill] sm:$0xff] %v3820_v4  ;;  %2807 = vmatprep.subr.bf16.mxu0 %v2806_v38  ;;  %v4371_v41 = vand.u32 4294901760, %v3820_v4  ;;  %v1046_v42 = vand.u32 4294901760, %v805_v21  ;;  %v3835_v32 = vpack.c.bf16 %v986_v8, %v983_v1  ;;  %v4374_v55 = vand.u32 4294901760, %v3825_v37 }
 0x28b   : > { %902 = vrot.lane.b32.xlu1 %v3460_v63, %s3086_s22  ;;  %890 = vrot.lane.b32.xlu0 %v3460_v63, %s3080_s15  ;;  %v2808_v62 = vpack.c.bf16 %v1146_v20, %v1139_v61  ;;  %v1265_v17 = vand.u32 4294901760, %v1264_v59  ;;  %v3841_v54 = vsub.f32 %v804_v35, %v1043_v18  ;;  %v1272_v38 = vand.u32 4294901760, %v1271_v2 }
 0x28c   : > { %v1152_v1 = vsub.f32 %v3820_v4, %v4371_v41  ;;  %v3850_v8 = vsub.f32 %v805_v21, %v1046_v42  ;;  %v995_v28 = vand.u32 4294901760, %v788_v60  ;;  %v1159_v35 = vsub.f32 %v3825_v37, %v4374_v55  ;;  %2777 = vmatpush3.bf16.msra.mxu1 %v3835_v32 }
 0x28d   : > { %4393 = vst [vmem:[#allocation12_spill] sm:$0xff] %v3841_v54  ;;  %2809 = vmatpush3.bf16.msra.mxu0 %v2808_v62  ;;  %v1277_v61 = vand.u32 4294901760, %v3841_v54  ;;  %v998_v20 = vand.u32 4294901760, %v789_v13  ;;  %v3857_v59 = vpack.c.bf16 %v1040_v45, %v1037_v47  ;;  %v2810_v2 = vpack.c.bf16 %v1272_v38, %v1265_v17 }
 0x28e   : > { %4395 = vst [vmem:[#allocation13_spill] sm:$0xff] %v3850_v8  ;;  %v1153_v57 = vand.u32 4294901760, %v1152_v1  ;;  %v1284_v50 = vand.u32 4294901760, %v3850_v8  ;;  %v3860_v41 = vsub.f32 %v788_v60, %v995_v28  ;;  %v1160_v21 = vand.u32 4294901760, %v1159_v35 }
 0x28f   : > { %914 = vrot.lane.b32.xlu1 %v3433_v51, %s3085_s21  ;;  %900 = vrot.lane.b32.xlu0 %v3433_v51, %s3086_s22  ;;  %v1278_v62 = vsub.f32 %v3841_v54, %v1277_v61  ;;  %v3863_v31 = vsub.f32 %v789_v13, %v998_v20  ;;  %v3866_v55 = vpack.c.bf16 %v992_v16, %v989_v33 }
 0x290   : > { %4396 = vst [vmem:[#allocation14_spill] sm:$0xff] %v3860_v41  ;;  %2779 = vmatprep.subr.bf16.mxu1 %v3857_v59  ;;  %v1285_v47 = vsub.f32 %v3850_v8, %v1284_v50  ;;  %v1165_v45 = vand.u32 4294901760, %v3860_v41  ;;  %v3874_v17 = vpack.c.bf16 %v1046_v42, %v1043_v18  ;;  %2811 = vmatprep.subr.bf16.mxu0 %v2810_v2 }
 0x291   : > { %4397 = vst [vmem:[#allocation15_spill] sm:$0xff] %v3863_v31  ;;  %v2812_v60 = vpack.c.bf16 %v1160_v21, %v1153_v57  ;;  %v1279_v13 = vand.u32 4294901760, %v1278_v62  ;;  %v1172_v38 = vand.u32 4294901760, %v3863_v31  ;;  %2781 = vmatpush3.bf16.msra.mxu1 %v3866_v55  ;;  %v3878_v33 = vpack.c.bf16 %v998_v20, %v995_v28 }
 0x292   : > { %v1286_v16 = vand.u32 4294901760, %v1285_v47  ;;  %v1166_v1 = vsub.f32 %v3860_v41, %v1165_v45  ;;  %2783 = vmatprep.subr.bf16.mxu1 %v3874_v17  ;;  %v3935_v47 = vpack.c.bf16 %v1284_v50, %v1277_v61  ;;  %v3065_v50 = vld [vmem:[%s4317_s11 + $0x1] ss:$2 sm:$0x3] }
 0x293   : > { %930 = vrot.lane.b32.xlu1 %v3460_v63, %s4384_s27  ;;  %916 = vrot.lane.b32.xlu0 %v3460_v63, %s3085_s21  ;;  %v1173_v57 = vsub.f32 %v3863_v31, %v1172_v38  ;;  %vm846_vm1 = vcmp.gt.f32.partialorder %v3065_v50, 0.0  ;;  %s4474_s21 = smov 2  }
 0x294   : > { %2813 = vmatpush3.bf16.msra.mxu0 %v2812_v60  ;;  %v2814_v42 = vpack.c.bf16 %v1286_v16, %v1279_v13  ;;  %v1167_v35 = vand.u32 4294901760, %v1166_v1  ;;  %v4398_v1 = vand.u32 4294901760, %v3751_v36  ;;  %v4399_v16 = vand.u32 4294901760, %v3763_v7  ;;  %4407 = vst [vmem:[#allocation19_spill] sm:$0xff] %v3935_v47 }
 0x295   : > { %v1174_v20 = vand.u32 4294901760, %v1173_v57  ;;  %2785 = vmatpush3.bf16.msra.mxu1 %v3878_v33  ;;  %v4401_v57 = vand.u32 4294901760, %v3790_v6  ;;  %v4402_v13 = vand.u32 4294901760, %v3796_v14  ;;  %v4405_v60 = vand.u32 4294901760, %v3825_v37 }
 0x296   : > { %2815 = vmatprep.subr.bf16.mxu0 %v2814_v42 }
 0x297   : > { %940 = vrot.lane.b32.xlu1 %v3433_v51, %s4394_s17  ;;  %928 = vrot.lane.b32.xlu0 %v3433_v51, %s4384_s27  ;;  %v2816_v21 = vpack.c.bf16 %v1174_v20, %v1167_v35  ;;  %v3927_v42 = vpack.c.bf16 %v4402_v13, %v4401_v57  ;;  %v4404_v35 = vand.u32 4294901760, %v3820_v4  ;;  %v3064_v13 = vld [vmem:[%s4317_s11] ss:$2 sm:$0x3]  ;;  %s3091_s27 = smov 9  }
 0x298   : > { %vm818_vm0 = vcmp.gt.f32.partialorder %v3064_v13, 0.0 }
 0x299   : > { %2817 = vmatpush3.bf16.msra.mxu0 %v2816_v21  ;;  %4403 = vst [vmem:[#allocation17_spill] sm:$0xff] %v3927_v42  ;;  %v3933_v20 = vpack.c.bf16 %v4405_v60, %v4404_v35  ;;  %v3937_v21 = vpack.c.bf16 %v1172_v38, %v1165_v45  ;;  %v4409_v45 = vmov 0  }
 0x29a   : > { %2851 = vmatprep.subr.bf16.mxu0 %v3525_v24  ;;  %v819_v38 = vsel %vm818_vm0, 1, %v4409_v45  ;;  %v847_v57 = vsel %vm846_vm1, 1, %v4409_v45 }
 0x29b   : > { %938 = vrot.lane.b32.xlu1 %v3356_v27, %s4394_s17  ;;  %942 = vrot.lane.b32.xlu0 %v3460_v63, %s4394_s17  ;;  %v2818_v63 = vpack.c.bf16 %v3343_v23, %v3338_v22  ;;  %4406 = vst [vmem:[#allocation18_spill] sm:$0xff] %v3933_v20  ;;  %4408 = vst [vmem:[#allocation20_spill] sm:$0xff] %v3937_v21  ;;  %v823_v35 = vrot.slane %v819_v38, %v3187_v3  ;;  %s4475_s17 = smov 18  }
 0x29c   : > { %v827_v21 = vrot.slane %v819_v38, %v3192_v5  ;;  %v851_v42 = vrot.slane %v847_v57, %v3187_v3  ;;  %v855_v13 = vrot.slane %v847_v57, %v3192_v5 }
 0x29d   : > { %2819 = vmatprep.subr.bf16.mxu1 %v2818_v63  ;;  %v3921_v63 = vpack.c.bf16 %v4399_v16, %v4398_v1  ;;  %vm3953_vm2 = vcmp.eq.s32.totalorder %v823_v35, 1 }
 0x29e   : > { %vm3957_vm3 = vcmp.eq.s32.totalorder %v827_v21, 1  ;;  %vm3962_vm4 = vcmp.eq.s32.totalorder %v851_v42, 1  ;;  %vm3967_vm5 = vcmp.eq.s32.totalorder %v855_v13, 1  ;;  %v830_v21 = vsel %vm3953_vm2, %v3356_v27, -inf }
 0x29f   : > { %4400 = vst [vmem:[#allocation16_spill] sm:$0xff] %v3921_v63  ;;  %v831_v13 = vsel %vm3957_vm3, %v3433_v51, -inf }
 0x2e1   : > { %v859_v62 = vpop.permute.xlu1 %858  ;;  %v835_v2 = vpop.permute.xlu0 %834 }
 0x2e5   : > { %v887_v16 = vpop.permute.xlu1 %886  ;;  %v873_v1 = vpop.permute.xlu0 %872 }
 0x2e9   : > { %v913_v28 = vpop.permute.xlu1 %912  ;;  %v899_v18 = vpop.permute.xlu0 %898 }
 0x2ed   : > { %v839_v63 = vpop.permute.xlu1 %838  ;;  %v3939_v41 = vpop.permute.xlu0 %926 }
 0x2f1   : > { %v861_v61 = vpop.permute.xlu1 %860  ;;  %v837_v60 = vpop.permute.xlu0 %836 }
 0x2f2   : > { %v840_v45 = vsel %vm580_vm7, %v835_v2, %v837_v60  ;;  %v864_v3 = vsel %vm594_vm8, %v859_v62, %v861_v61  ;;  %v841_v2 = vsel %vm580_vm7, %v837_v60, %v839_v63  ;;  %vm1823_vm7 = vcmask 596992  }
 0x2f3   : > { %v844_v35 = vmax.f32 %v830_v21, %v840_v45  ;;  %v868_v62 = vsel %vm3962_vm4, %v864_v3, -inf  ;;  %v845_v27 = vmax.f32 %v831_v13, %v841_v2 }
 0x2f5   : > { %v877_v47 = vpop.permute.xlu1 %876  ;;  %v863_v20 = vpop.permute.xlu0 %862 }
 0x2f6   : > { %v865_v57 = vsel %vm594_vm8, %v861_v61, %v863_v20  ;;  %vm3096_vm8 = vmmov 0  }
 0x2f7   : > { %v869_v20 = vsel %vm3967_vm5, %v865_v57, -inf }
 0x2f9   : > { %v889_v23 = vpop.permute.xlu1 %888  ;;  %v875_v22 = vpop.permute.xlu0 %874 }
 0x2fa   : > { %v878_v42 = vsel %vm611_vm12, %v873_v1, %v875_v22  ;;  %v879_v54 = vsel %vm611_vm12, %v875_v22, %v877_v47  ;;  %v870_v22 = vmax.f32 %v844_v35, %v868_v62  ;;  %v871_v47 = vmax.f32 %v845_v27, %v869_v20 }
 0x2fb   : > { %v882_v63 = vsel %vm3953_vm2, %v878_v42, -inf  ;;  %v883_v1 = vsel %vm3957_vm3, %v879_v54, -inf  ;;  %v892_v2 = vsel %vm622_vm6, %v887_v16, %v889_v23 }
 0x2fc   : > { %v884_v3 = vmax.f32 %v870_v22, %v882_v63  ;;  %v885_v21 = vmax.f32 %v871_v47, %v883_v1 }
 0x2fd   : > { %v903_v61 = vpop.permute.xlu1 %902  ;;  %v891_v8 = vpop.permute.xlu0 %890 }
 0x2fe   : > { %v893_v57 = vsel %vm622_vm6, %v889_v23, %v891_v8  ;;  %v896_v20 = vmax.f32 %v884_v3, %v892_v2  ;;  %vm1821_vm6 = vcmask 72704  }
 0x2ff   : > { %v897_v13 = vmax.f32 %v885_v21, %v893_v57 }
 0x301   : > { %v915_v60 = vpop.permute.xlu1 %914  ;;  %v901_v45 = vpop.permute.xlu0 %900 }
 0x302   : > { %v904_v51 = vsel %vm639_vm10, %v899_v18, %v901_v45  ;;  %v905_v4 = vsel %vm639_vm10, %v901_v45, %v903_v61  ;;  %v918_v61 = vsel %vm653_vm11, %v913_v28, %v915_v60  ;;  %vm2336_vm10 = vcmask 523264  }
 0x303   : > { %v908_v42 = vsel %vm3962_vm4, %v904_v51, -inf  ;;  %v909_v54 = vsel %vm3967_vm5, %v905_v4, -inf  ;;  %v922_v22 = vsel %vm3953_vm2, %v918_v61, -inf  ;;  %v4418_v61 = vld [vmem:[#allocation4_spill] sm:$0xff] }
 0x304   : > { %v910_v8 = vmax.f32 %v896_v20, %v908_v42  ;;  %v911_v63 = vmax.f32 %v897_v13, %v909_v54 }
 0x305   : > { %v931_v35 = vpop.permute.xlu1 %930  ;;  %v917_v62 = vpop.permute.xlu0 %916 }
 0x306   : > { %v919_v27 = vsel %vm653_vm11, %v915_v60, %v917_v62  ;;  %v924_v45 = vmax.f32 %v910_v8, %v922_v22  ;;  %v4419_v8 = vpack.c.bf16 %v3353_v26, %v3348_v25  ;;  %v4424_v22 = vld [vmem:[#allocation7_spill] sm:$0xff] }
 0x307   : > { %v923_v18 = vsel %vm3957_vm3, %v919_v27, -inf }
 0x308   : > { %v925_v1 = vmax.f32 %v911_v63, %v923_v18  ;;  %v4420_v63 = vld [vmem:[#allocation5_spill] sm:$0xff] }
 0x309   : > { %v941_v23 = vpop.permute.xlu1 %940  ;;  %v929_v16 = vpop.permute.xlu0 %928 }
 0x30a   : > { %v932_v4 = vsel %vm664_vm13, %v3939_v41, %v929_v16  ;;  %v933_v47 = vsel %vm664_vm13, %v929_v16, %v931_v35  ;;  %v4422_v16 = vld [vmem:[#allocation6_spill] sm:$0xff] }
 0x30b   : > { %v936_v50 = vmax.f32 %v924_v45, %v932_v4  ;;  %v937_v51 = vmax.f32 %v925_v1, %v933_v47  ;;  %v4423_v1 = vpack.c.bf16 %v3441_v56, %v3429_v49  ;;  %v4425_v4 = vpack.c.bf16 %v3480_v10, %v3447_v58  ;;  %v4426_v47 = vld [vmem:[#allocation8_spill] sm:$0xff] }
 0x30c   : > { %v4427_v45 = vpack.c.bf16 %v3513_v0, %v3508_v52 }
 0x30d   : > { %v939_v3 = vpop.permute.xlu1 %938  ;;  %v943_v21 = vpop.permute.xlu0 %942 }
 0x30e   : > { %v944_v28 = vsel %vm678_vm14, %v939_v3, %v941_v23  ;;  %v945_v60 = vsel %vm678_vm14, %v941_v23, %v943_v21  ;;  %v4421_v23 = vpack.c.bf16 %v3418_v44, %v3413_v43  ;;  %v4428_v3 = vld [vmem:[#allocation9_spill] sm:$0xff]  ;;  %v4429_v21 = vpack.c.bf16 %v3583_v29, %v3548_v48 }
 0x30f   : > { %v948_v57 = vsel %vm3962_vm4, %v944_v28, -inf  ;;  %v949_v31 = vsel %vm3967_vm5, %v945_v60, -inf  ;;  %v4432_v28 = vpack.c.bf16 %v3654_v46, %v3638_v39  ;;  %v4433_v60 = vpack.c.bf16 %v3687_v9, %v3668_v15 }
 0x310   : > { %v950_v2 = vmax.f32 %v936_v50, %v948_v57  ;;  %v951_v42 = vmax.f32 %v937_v51, %v949_v31  ;;  %v4430_v50 = vld [vmem:[#allocation10_spill] sm:$0xff]  ;;  %v4431_v51 = vpack.c.bf16 %v3605_v30, %v3600_v40  ;;  %v4434_v57 = vpack.c.bf16 %v3723_v53, %v3716_v11 }
 0x311   : > { %v4435_v31 = vpack.c.bf16 %v3763_v7, %v3751_v36  ;;  %v4442_v7 = vld [vmem:[#allocation2_spill] sm:$0xff] }
 0x312   : > { %v4012_v41 = vand.u32 4294901760, %v950_v2  ;;  %v1048_v54 = vand.u32 4294901760, %v951_v42 }
 0x314   : > { %v1055_v35 = vsub.f32 %v950_v2, %v4012_v41  ;;  %v1049_v62 = vsub.f32 %v951_v42, %v1048_v54  ;;  %1289 = vmatprep.mubr.f32.mxu0 %v1048_v54  ;;  %v4436_v2 = vpack.c.bf16 %v3796_v14, %v3790_v6  ;;  %v4437_v42 = vld [vmem:[#allocation11_spill] sm:$0xff]  ;;  %v4447_v14 = vld [vmem:[#allocation14_spill] sm:$0xff] }
 0x315   : > { %1291 = vmatmul.mubr.f32.vlgmr.msra.gmra.mrb[2].mxu0 %v4012_v41 }
 0x316   : > { %2853 = vmatpush3.bf16.msra.mxu0 %v3539_v12  ;;  %v1050_v13 = vand.u32 4294901760, %v1049_v62  ;;  %v1056_v20 = vand.u32 4294901760, %v1055_v35 }
 0x317   : > { %2855 = vmatprep.subr.bf16.mxu0 %v3565_v19 }
 0x318   : > { %1533 = vmatprep.mubr.f32.mxu0 %v1050_v13  ;;  %v1051_v38 = vsub.f32 %v1049_v62, %v1050_v13  ;;  %v1057_v5 = vsub.f32 %v1055_v35, %v1056_v20  ;;  %v4439_v13 = vld [vmem:[#allocation13_spill] sm:$0xff] }
 0x31a   : > { %2857 = vmatpush3.bf16.msra.mxu0 %v3589_v34  ;;  %v1052_v27 = vand.u32 4294901760, %v1051_v38  ;;  %v1058_v18 = vand.u32 4294901760, %v1057_v5  ;;  %v4440_v38 = vld [vmem:[#allocation12_spill] sm:$0xff]  ;;  %v4443_v5 = vand.u32 4294901760, %v4442_v7 }
 0x31b   : > { %2859 = vmatprep.subr.bf16.mxu0 %v4418_v61  ;;  %v4441_v36 = vpack.c.bf16 %v4439_v13, %v4440_v38 }
 0x31c   : > { %1053 = vmatprep.mubr.f32.mxu1 %v1052_v27  ;;  %v4444_v27 = vld [vmem:[#allocation3_spill] sm:$0xff] }
 0x31d   : > { %1059 = vmatmul.mubr.f32.vlgmr.msra.gmra.mrb[0].mxu1 %v1058_v18  ;;  %v4445_v18 = vand.u32 4294901760, %v4444_v27 }
 0x31e   : > { %2821 = vmatpush3.bf16.msra.mxu1 %v4419_v8  ;;  %2861 = vmatpush3.bf16.msra.mxu0 %v4420_v63 }
 0x31f   : > { %1426 = vmatprep.mubr.f32.mxu1 %v1049_v62  ;;  %2823 = vmatprep.subr.bf16.mxu1 %v4421_v23  ;;  %v4438_v62 = vpack.c.bf16 %v3825_v37, %v4437_v42  ;;  %v2882_v6 = vpack.c.bf16 %v4445_v18, %v4443_v5  ;;  %v4450_v37 = vand.u32 4294901760, %v3353_v26  ;;  %v4451_v23 = vand.u32 4294901760, %v3413_v43 }
 0x320   : > { %2863 = vmatprep.subr.bf16.mxu0 %v4422_v16  ;;  %v4456_v26 = vand.u32 4294901760, %v3480_v10  ;;  %v4457_v43 = vand.u32 4294901760, %v3508_v52  ;;  %v4462_v10 = vand.u32 4294901760, %v3605_v30  ;;  %v4463_v52 = vand.u32 4294901760, %v3638_v39  ;;  %v4471_v39 = vld [vmem:[#allocation18_spill] sm:$0xff] }
 0x321   : > { %v4468_v30 = vand.u32 4294901760, %v3723_v53  ;;  %v2404_v53 = vld [vmem:[%s4318_s12 + $0x1] ss:$0 sm:$0xff] }
 0x322   : > { %2825 = vmatpush3.bf16.msra.mxu1 %v4423_v1  ;;  %2865 = vmatpush3.bf16.msra.mxu0 %v4424_v22  ;;  %v4452_v1 = vand.u32 4294901760, %v3418_v44  ;;  %v4458_v44 = vand.u32 4294901760, %v3513_v0  ;;  %v4464_v0 = vand.u32 4294901760, %v3654_v46  ;;  %v4472_v46 = vld [vmem:[#allocation19_spill] sm:$0xff] }
 0x323   : > { %2827 = vmatprep.subr.bf16.mxu1 %v4425_v4  ;;  %2867 = vmatprep.subr.bf16.mxu0 %v4426_v47 }
 0x324   : > { %v2886_v4 = vpack.c.bf16 %v4452_v1, %v4451_v23  ;;  %1835 = vrot.lane.b32.xlu1 %v2404_v53, %s4474_s21  ;;  %s3095_s21 = smov 119  }
 0x326   : > { %2829 = vmatpush3.bf16.msra.mxu1 %v4427_v45  ;;  %2869 = vmatpush3.bf16.msra.mxu0 %v4428_v3 }
 0x327   : > { %2831 = vmatprep.subr.bf16.mxu1 %v4429_v21  ;;  %2871 = vmatprep.subr.bf16.mxu0 %v4430_v50 }
 0x328   : > { %1844 = vrot.lane.b32.xlu1 %v2404_v53, %s3090_s20  ;;  %s3097_s20 = smov 118  }
 0x32a   : > { %2833 = vmatpush3.bf16.msra.mxu1 %v4431_v51  ;;  %2873 = vmatpush3.bf16.msra.mxu0 %v3835_v32 }
 0x32b   : > { %2835 = vmatprep.subr.bf16.mxu1 %v4432_v28  ;;  %2875 = vmatprep.subr.bf16.mxu0 %v3857_v59 }
 0x32c   : > { %1852 = vrot.lane.b32.xlu1 %v2404_v53, %s4475_s17 }
 0x32e   : > { %2837 = vmatpush3.bf16.msra.mxu1 %v4433_v60  ;;  %2877 = vmatpush3.bf16.msra.mxu0 %v3866_v55 }
 0x32f   : > { %2839 = vmatprep.subr.bf16.mxu1 %v4434_v57  ;;  %2879 = vmatprep.subr.bf16.mxu0 %v3874_v17 }
 0x332   : > { %2841 = vmatpush3.bf16.msra.mxu1 %v4435_v31  ;;  %2881 = vmatpush3.bf16.msra.mxu0 %v3878_v33 }
 0x333   : > { %2843 = vmatprep.subr.bf16.mxu1 %v4436_v2  ;;  %2915 = vmatprep.subr.bf16.mxu0 %v3525_v24  ;;  %v4446_v24 = vld [vmem:[#allocation15_spill] sm:$0xff] }
 0x335   : > { %1537 = vmatmul.mubr.f32.vlgmr.msra.gmra.mrb[4].mxu0 %v1056_v20  ;;  %v4448_v20 = vpack.c.bf16 %v4446_v24, %v4447_v14  ;;  %v3093_v24 = vmov 0.0|0.0  }
 0x336   : > { %2845 = vmatpush3.bf16.msra.mxu1 %v4438_v62  ;;  %2917 = vmatpush3.bf16.msra.mxu0 %v3539_v12  ;;  %v4449_v12 = vand.u32 4294901760, %v3348_v25  ;;  %v4455_v25 = vand.u32 4294901760, %v3447_v58  ;;  %v4461_v58 = vand.u32 4294901760, %v3600_v40  ;;  %v4467_v40 = vand.u32 4294901760, %v3716_v11  ;;  %v4473_v11 = vld [vmem:[#allocation20_spill] sm:$0xff] }
 0x337   : > { %1807 = vmatprep.mubr.f32.mxu0 %v1048_v54  ;;  %2847 = vmatprep.subr.bf16.mxu1 %v4441_v36 }
 0x338   : > { %2919 = vmatprep.subr.bf16.mxu0 %v3565_v19  ;;  %v2884_v8 = vpack.c.bf16 %v4450_v37, %v4449_v12  ;;  %v4453_v19 = vand.u32 4294901760, %v3429_v49  ;;  %v4459_v49 = vand.u32 4294901760, %v3548_v48  ;;  %v4465_v48 = vand.u32 4294901760, %v3668_v15  ;;  %v4469_v15 = vld [vmem:[#allocation16_spill] sm:$0xff] }
 0x33a   : > { %2849 = vmatpush3.bf16.msra.mxu1 %v4448_v20  ;;  %2921 = vmatpush3.bf16.msra.mxu0 %v3589_v34  ;;  %v4454_v34 = vand.u32 4294901760, %v3441_v56  ;;  %v4460_v56 = vand.u32 4294901760, %v3583_v29  ;;  %v4466_v29 = vand.u32 4294901760, %v3687_v9  ;;  %v4470_v9 = vld [vmem:[#allocation17_spill] sm:$0xff] }
 0x33b   : > { %2883 = vmatprep.subr.bf16.mxu1 %v2882_v6  ;;  %2923 = vmatprep.subr.bf16.mxu0 %v4418_v61  ;;  %v2890_v61 = vpack.c.bf16 %v4456_v26, %v4455_v25  ;;  %v4155_v6 = vld [vmem:[%s4318_s12] ss:$0 sm:$0xff] }
 0x33c   : > { %v2888_v45 = vpack.c.bf16 %v4454_v34, %v4453_v19 }
 0x33d   : > { %1429 = vmatmul.mubr.f32.vlgmr.msra.gmra.mrb[2].mxu1 %v1055_v35  ;;  %v2894_v35 = vpack.c.bf16 %v4460_v56, %v4459_v49 }
 0x33e   : > { %2885 = vmatpush3.bf16.msra.mxu1 %v2884_v8  ;;  %1703 = vmatprep.mubr.f32.mxu1 %v1048_v54  ;;  %v2892_v54 = vpack.c.bf16 %v4458_v44, %v4457_v43  ;;  %v1816_v43 = vld [vmem:[%s4310_s4] sm:$0xff] }
 0x33f   : > { %2925 = vmatpush3.bf16.msra.mxu0 %v4420_v63  ;;  %2887 = vmatprep.subr.bf16.mxu1 %v2886_v4  ;;  %v2896_v63 = vpack.c.bf16 %v4462_v10, %v4461_v58 }
 0x340   : > { %2927 = vmatprep.subr.bf16.mxu0 %v4422_v16  ;;  %v2898_v16 = vpack.c.bf16 %v4464_v0, %v4463_v52 }
 0x342   : > { %2889 = vmatpush3.bf16.msra.mxu1 %v2888_v45  ;;  %v4477_v45 = vmov 0.0  }
 0x343   : > { %2929 = vmatpush3.bf16.msra.mxu0 %v4424_v22  ;;  %2891 = vmatprep.subr.bf16.mxu1 %v2890_v61  ;;  %v2900_v22 = vpack.c.bf16 %v4466_v29, %v4465_v48  ;;  %v1815_v29 = vld [vmem:[%s4309_s3] sm:$0xff] }
 0x344   : > { %2931 = vmatprep.subr.bf16.mxu0 %v4426_v47  ;;  %v2902_v47 = vpack.c.bf16 %v4468_v30, %v4467_v40 }
 0x346   : > { %2893 = vmatpush3.bf16.msra.mxu1 %v2892_v54 }
 0x347   : > { %2933 = vmatpush3.bf16.msra.mxu0 %v4428_v3  ;;  %2895 = vmatprep.subr.bf16.mxu1 %v2894_v35 }
 0x348   : > { %2935 = vmatprep.subr.bf16.mxu0 %v4430_v50 }
 0x34a   : > { %2897 = vmatpush3.bf16.msra.mxu1 %v2896_v63 }
 0x34b   : > { %2937 = vmatpush3.bf16.msra.mxu0 %v3835_v32  ;;  %2899 = vmatprep.subr.bf16.mxu1 %v2898_v16 }
 0x34c   : > { %2939 = vmatprep.subr.bf16.mxu0 %v3857_v59 }
 0x34e   : > { %2901 = vmatpush3.bf16.msra.mxu1 %v2900_v22 }
 0x34f   : > { %2941 = vmatpush3.bf16.msra.mxu0 %v3866_v55  ;;  %2903 = vmatprep.subr.bf16.mxu1 %v2902_v47 }
 0x350   : > { %2943 = vmatprep.subr.bf16.mxu0 %v3874_v17 }
 0x352   : > { %2905 = vmatpush3.bf16.msra.mxu1 %v4469_v15 }
 0x353   : > { %2945 = vmatpush3.bf16.msra.mxu0 %v3878_v33  ;;  %2907 = vmatprep.subr.bf16.mxu1 %v4470_v9 }
 0x354   : > { %2958 = vmatprep.subr.bf16.mxu0 %v3093_v24 }
 0x356   : > { %1809 = vmatmul.mubr.f32.vlgmr.msra.gmra.mrb[6].mxu0 %v4012_v41  ;;  %2909 = vmatpush3.bf16.msra.mxu1 %v4471_v39 }
 0x357   : > { %2911 = vmatprep.subr.bf16.mxu1 %v4472_v46  ;;  %2701 = vmatprep.mubr.msk.f32.mxu0 %vm3096_vm8, %v4477_v45 }
 0x35a   : > { %2913 = vmatpush3.bf16.msra.mxu1 %v4473_v11 }
 0x35b   : > { %2946 = vmatprep.subr.bf16.mxu1 %v3093_v24 }
 0x35d   : > { %1705 = vmatmul.mubr.f32.vlgmr.msra.gmra.mrb[4].mxu1 %v4012_v41 }
 0x35e   : > { %2680 = vmatprep.mubr.msk.f32.mxu1 %vm3096_vm8, %v4477_v45 }
 0x396   : > { %v4162_v14 = vpop.permute.xlu1 %1835 }
 0x39a   : > { %v4172_v4 = vpop.permute.xlu1 %1844 }
 0x39e   : > { %v4185_v26 = vpop.permute.xlu1 %1852 }
 0x3e8   : > { %v2479_v55 = vpop.f32.mrb[2].mxu0 }
 0x3e9   : > { %v2480_v32 = vpop.f32.mrb[3].mxu0 }
 0x3ea   : > { %v2481_v59 = vadd.f32 %v2480_v32, %v2479_v55 }
 0x3f0   : > { %v2444_v17 = vpop.f32.mrb[0].mxu1 }
 0x3f1   : > { %v2445_v33 = vpop.f32.mrb[1].mxu1 }
 0x3f2   : > { %v2446_v3 = vadd.f32 %v2445_v33, %v2444_v17  ;;  %v1967_v33 = vld [vmem:[%s4312_s6] sm:$0xff] }
 0x3f4   : > { %v1293_v21 = vadd.f32 %v2481_v59, %v2446_v3 }
 0x408   : > { %v2549_v50 = vpop.f32.mrb[4].mxu0 }
 0x409   : > { %v2550_v51 = vpop.f32.mrb[5].mxu0 }
 0x40a   : > { %v2551_v41 = vadd.f32 %v2550_v51, %v2549_v50 }
 0x410   : > { %v2514_v28 = vpop.f32.mrb[2].mxu1 }
 0x411   : > { %v2515_v60 = vpop.f32.mrb[3].mxu1 }
 0x412   : > { %v2516_v57 = vadd.f32 %v2515_v60, %v2514_v28 }
 0x414   : > { %v1431_v31 = vadd.f32 %v2516_v57, %v1293_v21 }
 0x416   : > { %v1539_v2 = vadd.f32 %v2551_v41, %v1431_v31 }
 0x429   : > { %v2619_v42 = vpop.f32.mrb[6].mxu0 }
 0x42a   : > { %v2620_v62 = vpop.f32.mrb[7].mxu0 }
 0x42b   : > { %v2621_v13 = vadd.f32 %v2620_v62, %v2619_v42 }
 0x430   : > { %v2584_v38 = vpop.f32.mrb[4].mxu1 }
 0x431   : > { %v2585_v36 = vpop.f32.mrb[5].mxu1 }
 0x432   : > { %v2586_v7 = vadd.f32 %v2585_v36, %v2584_v38 }
 0x434   : > { %v1707_v5 = vadd.f32 %v2586_v7, %v1539_v2 }
 0x436   : > { %v4148_v27 = vadd.f32 %v2621_v13, %v1707_v5  ;;  %v1966_v13 = vld [vmem:[%s4311_s5] sm:$0xff] }
 0x438   : > { %v1814_v18 = vmax.f32 %v4148_v27, 0.0 }
 0x43a   : > { %1818 = vrot.lane.b32.xlu0 %v1814_v18, %s3091_s27 }
 0x43e   : > { %1840 = vrot.lane.b32.xlu0 %v4155_v6, %s3092_s24 }
 0x442   : > { %1848 = vrot.lane.b32.xlu0 %v4155_v6, %s4476_s25 }
 0x4ac   : > { %v1819_v20 = vpop.permute.xlu0 %1818 }
 0x4ad   : > { %v1822_v12 = vsel %vm1821_vm6, 0.0, %v1819_v20 }
 0x4ae   : > { %v1824_v37 = vsel %vm1823_vm7, %v1822_v12, 0.0 }
 0x4af   : > { %1857 = vrot.lane.b32.xlu0 %v1824_v37, %s3081_s16  ;;  %v1838_v8 = vmul.f32 %v4162_v14, %v1824_v37  ;;  %v1847_v34 = vmul.f32 %v4172_v4, %v1824_v37  ;;  %v1855_v61 = vmul.f32 %v4185_v26, %v1824_v37  ;;  %v1829_v44 = vmul.f32 %v4155_v6, %v1824_v37 }
 0x4b0   : > { %v4168_v23 = vpop.permute.xlu0 %1840 }
 0x4b1   : > { %1861 = vrot.lane.b32.xlu1 %v1838_v8, %s3082_s18  ;;  %v1843_v1 = vmul.f32 %v4168_v23, %v1824_v37 }
 0x4b3   : > { %1865 = vrot.lane.b32.xlu0 %v1843_v1, %s3094_s26 }
 0x4b4   : > { %v4175_v19 = vpop.permute.xlu0 %1848 }
 0x4b5   : > { %1868 = vrot.lane.b32.xlu1 %v1824_v37, %s3095_s21  ;;  %v1851_v25 = vmul.f32 %v4175_v19, %v1824_v37 }
 0x4b7   : > { %1872 = vrot.lane.b32.xlu0 %v1847_v34, %s3097_s20 }
 0x4b9   : > { %1876 = vrot.lane.b32.xlu1 %v1851_v25, %s3083_s19 }
 0x4bb   : > { %1879 = vrot.lane.b32.xlu0 %v1824_v37, %s3080_s15 }
 0x4bd   : > { %1883 = vrot.lane.b32.xlu1 %v1855_v61, %s3086_s22 }
 0x4bf   : > { %1888 = vperm.xlu0 %3062, %v1816_v43  }
 0x521   : > { %v1858_v54 = vpop.permute.xlu0 %1857 }
 0x522   : > { %v2947_v49 = vpack.c.bf16 %v1858_v54, %v1829_v44  ;;  %v2091_v44 = vld [vmem:[%s4314_s8] sm:$0xff] }
 0x523   : > { %v1862_v56 = vpop.permute.xlu1 %1861 }
 0x524   : > { %2948 = vmatpush3.bf16.msra.mxu1 %v2947_v49 }
 0x525   : > { %v1866_v35 = vpop.permute.xlu0 %1865  ;;  %2949 = vmatprep.subr.bf16.mxu1 %v3093_v24 }
 0x526   : > { %v2950_v58 = vpack.c.bf16 %v1866_v35, %v1862_v56 }
 0x527   : > { %v1869_v10 = vpop.permute.xlu1 %1868 }
 0x528   : > { %2951 = vmatpush3.bf16.msra.mxu1 %v2950_v58 }
 0x529   : > { %v1873_v63 = vpop.permute.xlu0 %1872  ;;  %2952 = vmatprep.subr.bf16.mxu1 %v3093_v24 }
 0x52a   : > { %v2953_v52 = vpack.c.bf16 %v1873_v63, %v1869_v10 }
 0x52b   : > { %v1877_v0 = vpop.permute.xlu1 %1876 }
 0x52c   : > { %2954 = vmatpush3.bf16.msra.mxu1 %v2953_v52 }
 0x52d   : > { %v1880_v16 = vpop.permute.xlu0 %1879  ;;  %2955 = vmatprep.subr.bf16.mxu1 %v3093_v24 }
 0x52e   : > { %v2956_v48 = vpack.c.bf16 %v1880_v16, %v1877_v0 }
 0x52f   : > { %v1884_v22 = vpop.permute.xlu1 %1883 }
 0x530   : > { %2957 = vmatpush3.bf16.msra.mxu1 %v2956_v48 }
 0x531   : > { %2678 = vmatprep.subr.mxu1 %v4477_v45 }
 0x534   : > { %2679 = vmatpush3.msra.mxu1 %v1884_v22  ;;  %v2090_v22 = vld [vmem:[%s4313_s7] sm:$0xff] }
 0x535   : > { %2681 = vmatmul.mubr.msk.f32.vlgmr.msra.gmra.mrb[6].mxu1 %vm1891_vm9, %v1815_v29  ;;  %2970 = vmatprep.subr.bf16.mxu1 %v3093_v24 }
 0x536   : > { %2722 = vmatprep.mubr.msk.f32.mxu1 %vm3096_vm8, %v4477_v45 }
 0x53e   : > { %v1889_v40 = vpop.permute.xlu0 %1888 }
 0x608   : > { %v1961_v30 = vpop.f32.mrb[6].mxu1 }
 0x609   : > { %v1962_v47 = vadd.f32 %v1961_v30, %v1889_v40  ;;  %v2682_v15 = vpop.f32.mrb[7].mxu1 }
 0x60b   : > { %v1965_v9 = vmax.f32 %v1962_v47, 0.0 }
 0x60d   : > { %1969 = vrot.lane.b32.xlu1 %v1965_v9, %s3091_s27 }
 0x67f   : > { %v1970_v39 = vpop.permute.xlu1 %1969 }
 0x680   : > { %v1972_v46 = vsel %vm1821_vm6, 0.0, %v1970_v39 }
 0x681   : > { %v1973_v11 = vsel %vm1823_vm7, %v1972_v46, 0.0 }
 0x682   : > { %1981 = vrot.lane.b32.xlu1 %v1973_v11, %s3081_s16  ;;  %v1975_v53 = vmul.f32 %v1973_v11, %v4162_v14  ;;  %v1976_v55 = vmul.f32 %v1973_v11, %v4168_v23  ;;  %v1977_v32 = vmul.f32 %v1973_v11, %v4172_v4  ;;  %v1978_v59 = vmul.f32 %v1973_v11, %v4175_v19 }
 0x683   : > { %v1979_v17 = vmul.f32 %v1973_v11, %v4185_v26  ;;  %v1974_v3 = vmul.f32 %v4155_v6, %v1973_v11 }
 0x684   : > { %1985 = vrot.lane.b32.xlu0 %v1975_v53, %s3082_s18 }
 0x686   : > { %1989 = vrot.lane.b32.xlu1 %v1976_v55, %s3094_s26 }
 0x688   : > { %1992 = vrot.lane.b32.xlu0 %v1973_v11, %s3095_s21 }
 0x68a   : > { %1996 = vrot.lane.b32.xlu1 %v1977_v32, %s3097_s20 }
 0x68c   : > { %2000 = vrot.lane.b32.xlu0 %v1978_v59, %s3083_s19 }
 0x68e   : > { %2003 = vrot.lane.b32.xlu1 %v1973_v11, %s3080_s15 }
 0x690   : > { %2007 = vrot.lane.b32.xlu0 %v1979_v17, %s3086_s22 }
 0x692   : > { %2012 = vperm.xlu1 %3061, %v1967_v33  }
 0x6f4   : > { %v1982_v21 = vpop.permute.xlu1 %1981 }
 0x6f5   : > { %v2959_v50 = vpack.c.bf16 %v1982_v21, %v1974_v3 }
 0x6f6   : > { %v1986_v51 = vpop.permute.xlu0 %1985 }
 0x6f7   : > { %2960 = vmatpush3.bf16.msra.mxu0 %v2959_v50 }
 0x6f8   : > { %v1990_v41 = vpop.permute.xlu1 %1989  ;;  %2961 = vmatprep.subr.bf16.mxu0 %v3093_v24 }
 0x6f9   : > { %v2962_v28 = vpack.c.bf16 %v1990_v41, %v1986_v51 }
 0x6fa   : > { %v1993_v60 = vpop.permute.xlu0 %1992 }
 0x6fb   : > { %2963 = vmatpush3.bf16.msra.mxu0 %v2962_v28 }
 0x6fc   : > { %v1997_v57 = vpop.permute.xlu1 %1996  ;;  %2964 = vmatprep.subr.bf16.mxu0 %v3093_v24 }
 0x6fd   : > { %v2965_v31 = vpack.c.bf16 %v1997_v57, %v1993_v60  ;;  %v2213_v57 = vld [vmem:[%s4315_s9] sm:$0xff] }
 0x6fe   : > { %v2001_v2 = vpop.permute.xlu0 %2000 }
 0x6ff   : > { %2966 = vmatpush3.bf16.msra.mxu0 %v2965_v31 }
 0x700   : > { %v2004_v42 = vpop.permute.xlu1 %2003  ;;  %2967 = vmatprep.subr.bf16.mxu0 %v3093_v24 }
 0x701   : > { %v2968_v62 = vpack.c.bf16 %v2004_v42, %v2001_v2 }
 0x702   : > { %v2008_v38 = vpop.permute.xlu0 %2007 }
 0x703   : > { %2969 = vmatpush3.bf16.msra.mxu0 %v2968_v62 }
 0x704   : > { %2699 = vmatprep.subr.mxu0 %v4477_v45 }
 0x707   : > { %2700 = vmatpush3.msra.mxu0 %v2008_v38 }
 0x708   : > { %2702 = vmatmul.mubr.msk.f32.vlgmr.msra.gmra.mrb[8].mxu0 %vm1891_vm9, %v1966_v13  ;;  %2982 = vmatprep.subr.bf16.mxu0 %v3093_v24 }
 0x709   : > { %2743 = vmatprep.mubr.msk.f32.mxu0 %vm3096_vm8, %v4477_v45 }
 0x711   : > { %v2013_v36 = vpop.permute.xlu1 %2012 }
 0x7db   : > { %v2084_v7 = vpop.f32.mrb[8].mxu0 }
 0x7dc   : > { %v2085_v5 = vadd.f32 %v2084_v7, %v2013_v36  ;;  %v2703_v18 = vpop.f32.mrb[9].mxu0 }
 0x7de   : > { %v4238_v20 = vadd.f32 %v2085_v5, %v4148_v27 }
 0x7e0   : > { %v2089_v12 = vmax.f32 %v4238_v20, 0.0 }
 0x7e2   : > { %2093 = vrot.lane.b32.xlu0 %v2089_v12, %s3091_s27 }
 0x854   : > { %v2094_v37 = vpop.permute.xlu0 %2093 }
 0x855   : > { %v2096_v8 = vsel %vm1821_vm6, 0.0, %v2094_v37 }
 0x856   : > { %v2097_v1 = vsel %vm1823_vm7, %v2096_v8, 0.0 }
 0x857   : > { %2105 = vrot.lane.b32.xlu1 %v2097_v1, %s3081_s16  ;;  %v2099_v34 = vmul.f32 %v2097_v1, %v4162_v14  ;;  %v2100_v25 = vmul.f32 %v2097_v1, %v4168_v23  ;;  %v2101_v27 = vmul.f32 %v2097_v1, %v4172_v4  ;;  %v2102_v61 = vmul.f32 %v2097_v1, %v4175_v19 }
 0x858   : > { %v2103_v43 = vmul.f32 %v2097_v1, %v4185_v26  ;;  %v2098_v54 = vmul.f32 %v4155_v6, %v2097_v1 }
 0x859   : > { %2109 = vrot.lane.b32.xlu0 %v2099_v34, %s3082_s18 }
 0x85b   : > { %2113 = vrot.lane.b32.xlu1 %v2100_v25, %s3094_s26 }
 0x85d   : > { %2116 = vrot.lane.b32.xlu0 %v2097_v1, %s3095_s21 }
 0x85f   : > { %2120 = vrot.lane.b32.xlu1 %v2101_v27, %s3097_s20 }
 0x861   : > { %2124 = vrot.lane.b32.xlu0 %v2102_v61, %s3083_s19 }
 0x863   : > { %2127 = vrot.lane.b32.xlu1 %v2097_v1, %s3080_s15 }
 0x865   : > { %2131 = vrot.lane.b32.xlu0 %v2103_v43, %s3086_s22 }
 0x867   : > { %2136 = vperm.xlu1 %3061, %v2091_v44  }
 0x8c9   : > { %v2106_v49 = vpop.permute.xlu1 %2105 }
 0x8ca   : > { %v2971_v56 = vpack.c.bf16 %v2106_v49, %v2098_v54 }
 0x8cb   : > { %v2110_v35 = vpop.permute.xlu0 %2109 }
 0x8cc   : > { %2972 = vmatpush3.bf16.msra.mxu1 %v2971_v56 }
 0x8cd   : > { %v2114_v58 = vpop.permute.xlu1 %2113  ;;  %2973 = vmatprep.subr.bf16.mxu1 %v3093_v24 }
 0x8ce   : > { %v2974_v10 = vpack.c.bf16 %v2114_v58, %v2110_v35 }
 0x8cf   : > { %v2117_v63 = vpop.permute.xlu0 %2116 }
 0x8d0   : > { %2975 = vmatpush3.bf16.msra.mxu1 %v2974_v10 }
 0x8d1   : > { %v2121_v52 = vpop.permute.xlu1 %2120  ;;  %2976 = vmatprep.subr.bf16.mxu1 %v3093_v24 }
 0x8d2   : > { %v2977_v0 = vpack.c.bf16 %v2121_v52, %v2117_v63 }
 0x8d3   : > { %v2125_v16 = vpop.permute.xlu0 %2124 }
 0x8d4   : > { %2978 = vmatpush3.bf16.msra.mxu1 %v2977_v0 }
 0x8d5   : > { %v2128_v48 = vpop.permute.xlu1 %2127  ;;  %2979 = vmatprep.subr.bf16.mxu1 %v3093_v24 }
 0x8d6   : > { %v2980_v29 = vpack.c.bf16 %v2128_v48, %v2125_v16 }
 0x8d7   : > { %v2132_v40 = vpop.permute.xlu0 %2131 }
 0x8d8   : > { %2981 = vmatpush3.bf16.msra.mxu1 %v2980_v29 }
 0x8d9   : > { %2720 = vmatprep.subr.mxu1 %v4477_v45 }
 0x8dc   : > { %2721 = vmatpush3.msra.mxu1 %v2132_v40 }
 0x8dd   : > { %2723 = vmatmul.mubr.msk.f32.vlgmr.msra.gmra.mrb[8].mxu1 %vm1891_vm9, %v2090_v22 }
 0x8e6   : > { %v2137_v30 = vpop.permute.xlu1 %2136 }
 0x9b0   : > { %v2208_v47 = vpop.f32.mrb[8].mxu1 }
 0x9b1   : > { %v2209_v15 = vadd.f32 %v2208_v47, %v2137_v30  ;;  %v2724_v9 = vpop.f32.mrb[9].mxu1 }
 0x9b3   : > { %v2212_v39 = vmax.f32 %v2209_v15, 0.0 }
 0x9b5   : > { %2216 = vrot.lane.b32.xlu0 %v2212_v39, %s3091_s27 }
 0xa27   : > { %v2217_v46 = vpop.permute.xlu0 %2216 }
 0xa28   : > { %v2219_v11 = vsel %vm1821_vm6, 0.0, %v2217_v46 }
 0xa29   : > { %v2220_v53 = vsel %vm1823_vm7, %v2219_v11, 0.0 }
 0xa2a   : > { %2228 = vrot.lane.b32.xlu1 %v2220_v53, %s3081_s16  ;;  %v2222_v55 = vmul.f32 %v2220_v53, %v4162_v14  ;;  %v2223_v32 = vmul.f32 %v2220_v53, %v4168_v23  ;;  %v2224_v59 = vmul.f32 %v2220_v53, %v4172_v4  ;;  %v2225_v17 = vmul.f32 %v2220_v53, %v4175_v19  ;;  %v2214_v23 = vld [vmem:[%s4316_s10] sm:$0xff] }
 0xa2b   : > { %v2226_v14 = vmul.f32 %v2220_v53, %v4185_v26  ;;  %v2221_v33 = vmul.f32 %v4155_v6, %v2220_v53 }
 0xa2c   : > { %2232 = vrot.lane.b32.xlu0 %v2222_v55, %s3082_s18 }
 0xa2e   : > { %2236 = vrot.lane.b32.xlu1 %v2223_v32, %s3094_s26 }
 0xa30   : > { %2239 = vrot.lane.b32.xlu0 %v2220_v53, %s3095_s21 }
 0xa32   : > { %2243 = vrot.lane.b32.xlu1 %v2224_v59, %s3097_s20 }
 0xa34   : > { %2247 = vrot.lane.b32.xlu0 %v2225_v17, %s3083_s19 }
 0xa36   : > { %2250 = vrot.lane.b32.xlu1 %v2220_v53, %s3080_s15 }
 0xa38   : > { %2254 = vrot.lane.b32.xlu0 %v2226_v14, %s3086_s22  ;;  %s4478_s22 = sshll.u32 %s4480_s30, 3 }
 0xa39   : > { %s465_s21 = scalar_lea.vmem %s4320_s14, %s4478_s22 }
 0xa3a   : > { %2259 = vperm.xlu1 %3061, %v2214_v23  }
 0xa9c   : > { %v2229_v4 = vpop.permute.xlu1 %2228 }
 0xa9d   : > { %v2983_v3 = vpack.c.bf16 %v2229_v4, %v2221_v33 }
 0xa9e   : > { %v2233_v21 = vpop.permute.xlu0 %2232 }
 0xa9f   : > { %2984 = vmatpush3.bf16.msra.mxu0 %v2983_v3 }
 0xaa0   : > { %v2237_v19 = vpop.permute.xlu1 %2236  ;;  %2985 = vmatprep.subr.bf16.mxu0 %v3093_v24 }
 0xaa1   : > { %v2986_v50 = vpack.c.bf16 %v2237_v19, %v2233_v21 }
 0xaa2   : > { %v2240_v51 = vpop.permute.xlu0 %2239 }
 0xaa3   : > { %2987 = vmatpush3.bf16.msra.mxu0 %v2986_v50 }
 0xaa4   : > { %v2244_v26 = vpop.permute.xlu1 %2243  ;;  %2988 = vmatprep.subr.bf16.mxu0 %v3093_v24 }
 0xaa5   : > { %v2989_v41 = vpack.c.bf16 %v2244_v26, %v2240_v51 }
 0xaa6   : > { %v2248_v28 = vpop.permute.xlu0 %2247 }
 0xaa7   : > { %2990 = vmatpush3.bf16.msra.mxu0 %v2989_v41 }
 0xaa8   : > { %v2251_v60 = vpop.permute.xlu1 %2250  ;;  %2991 = vmatprep.subr.bf16.mxu0 %v3093_v24 }
 0xaa9   : > { %v2992_v6 = vpack.c.bf16 %v2251_v60, %v2248_v28 }
 0xaaa   : > { %v2255_v31 = vpop.permute.xlu0 %2254 }
 0xaab   : > { %2993 = vmatpush3.bf16.msra.mxu0 %v2992_v6 }
 0xaac   : > { %2741 = vmatprep.subr.mxu0 %v4477_v45 }
 0xaaf   : > { %2742 = vmatpush3.msra.mxu0 %v2255_v31 }
 0xab0   : > { %2744 = vmatmul.mubr.msk.f32.vlgmr.msra.gmra.mrb[10].mxu0 %vm1891_vm9, %v2213_v57 }
 0xab9   : > { %v2260_v2 = vpop.permute.xlu1 %2259 }
 0xb83   : > { %v2331_v42 = vpop.f32.mrb[10].mxu0 }
 0xb84   : > { %v2332_v62 = vadd.f32 %v2331_v42, %v2260_v2  ;;  %v2745_v13 = vpop.f32.mrb[11].mxu0 }
 0xb86   : > { %v2335_v24 = vadd.f32 %v2332_v62, %v4238_v20 }
 0xb88   : > { %2337 = vst.msk [vmem:[%s465_s21] sm:$0xff] %vm2336_vm10, %v2335_v24 }
 0xb89 PF: > { %s24_s29 = sadd.s32 1, %s3072_s29  }
 0xb8a   : > { %p21_p4 = scmp.ge.s32.totalorder %s24_s29, 4  }
 0xb8c   :  { %23 = sbr.rel (!%p21_p4) target bundleno = 1 (0x1), region = 107 }

</bundles_post_ra>
